<compile_context>
chip_gen: v7x
topology: tpu7x:2x2x1
jax: 0.10.0
libtpu: 0.0.40
codegen_flags: <defaults>
</compile_context>

<pallas_src>
import functools

import jax
import jax.numpy as jnp
from jax.experimental import pallas as pl
from jax.experimental.pallas import tpu as pltpu

_NEG = -1.0e30  # finite "-inf": masked entries never create NaN via inf - inf


def _multipos_kernel(scale_ref, y_col_ref, y_row_ref, zi_ref, zj_ref,   # inputs
                     colp_ref, rowp_ref,                                # outputs
                     row_max, row_se, row_pos, row_cnt,                 # scratch
                     *, b_actual, padded):
    i = pl.program_id(0)            # row-tile index ("parallel": megacore-splittable)
    k = pl.program_id(1)            # col-tile index ("arbitrary": row stats carried)
    nk = pl.num_programs(1)

    blk_q = zi_ref.shape[0]
    blk_k = zj_ref.shape[0]

    # ---- per-row-tile accumulators: reset at the start of each column sweep ----
    @pl.when(k == 0)
    def _():
        row_max[...] = jnp.full_like(row_max, _NEG)
        row_se[...] = jnp.zeros_like(row_se)
        row_pos[...] = jnp.zeros_like(row_pos)
        row_cnt[...] = jnp.zeros_like(row_cnt)

    scale = scale_ref[0, 0]

    # Single bf16 MXU matmul per tile, f32 accumulation, contraction over features.
    logits = jax.lax.dot_general(
        zi_ref[...], zj_ref[...], (((1,), (1,)), ((), ())),
        preferred_element_type=jnp.float32) * scale                  # (blk_q, blk_k)

    # Positive mask from integer labels (row labels resident; leading-axis index).
    label_eq = y_col_ref[...] == y_row_ref[k]                        # (blk_q, blk_k)

    if padded:
        row_ids = i * blk_q + jax.lax.broadcasted_iota(jnp.int32, (blk_q, 1), 0)
        col_ids = k * blk_k + jax.lax.broadcasted_iota(jnp.int32, (1, blk_k), 1)
        valid = jnp.logical_and(row_ids < b_actual, col_ids < b_actual)
        logits = jnp.where(valid, logits, _NEG)
        mask = jnp.logical_and(label_eq, valid).astype(jnp.float32)
    else:
        mask = label_eq.astype(jnp.float32)

    # ---- online row (image -> text) statistics ----
    t_rmax = jnp.max(logits, axis=1, keepdims=True)                  # (blk_q, 1)
    r_max_new = jnp.maximum(row_max[...], t_rmax)
    corr = jnp.exp(row_max[...] - r_max_new)
    p_exp = jnp.exp(logits - r_max_new)                              # the ONE full-tile exp
    row_se[...] = row_se[...] * corr + jnp.sum(p_exp, axis=1, keepdims=True)
    row_pos[...] += jnp.sum(mask * logits, axis=1, keepdims=True)
    row_cnt[...] += jnp.sum(mask, axis=1, keepdims=True)
    row_max[...] = r_max_new

    # ---- per-tile column (text -> image) LSE partial, reusing p_exp ----
    # exp(logits - m_tile) = p_exp * exp(r_max_new - m_tile);  m_tile >= every running
    # row max, so the weights never overflow.
    m_tile = jnp.max(r_max_new)                                      # scalar
    w = jnp.exp(r_max_new - m_tile)                                  # (blk_q, 1)
    colpart = jnp.sum(p_exp * w, axis=0, keepdims=True)              # (1, blk_k)
    # TODO(synk): this axis-0 reduce could move to the MXU via a TN dot_general
    # (w^T @ p_exp) if profiling ever shows the XLU as the binding slot.
    colpart = jnp.maximum(colpart, 1e-37)                            # log(0) guard (padding)
    colp_ref[...] = (m_tile + jnp.log(colpart)).reshape(1, 1, blk_k)

    # ---- finalize this row tile at the end of its column sweep ----
    @pl.when(k == nk - 1)
    def _():
        row_lse = row_max[...] + jnp.log(row_se[...])                # (blk_q, 1)
        # The text-side positive term equals the image-side one in total (the mask is
        # the symmetric label-equality matrix with equal class counts), so count the
        # image-side positive term twice instead of carrying column positive stats.
        pos_mean = row_pos[...] / jnp.maximum(row_cnt[...], 1.0)
        contrib = row_lse - 2.0 * pos_mean
        if padded:
            rid = i * blk_q + jax.lax.broadcasted_iota(jnp.int32, (blk_q, 1), 0)
            contrib = jnp.where(rid < b_actual, contrib, 0.0)
        rowp_ref[...] = jnp.sum(contrib, keepdims=True).reshape(1, 1, 1)


def _round_up(x: int, m: int) -> int:
    return ((x + m - 1) // m) * m


def _choose_tiles(b: int, d: int):
    """Largest square tile in {512,256,128} fitting ~40 MiB VMEM w/o excessive padding."""
    b128 = _round_up(b, 128)
    vmem_budget = 40 * 1024 * 1024
    for blk in (512, 256, 128):
        if blk > b128:
            continue
        # double-buffered bf16 z_i/z_j tiles + ~6 f32 (blk,blk) per-tile temporaries
        if 8 * blk * d + 24 * blk * blk > vmem_budget:
            continue
        b_pad = _round_up(b, blk)
        # accept at most ~25% extra padded cell-work vs. minimal (128-aligned) padding
        if b_pad * b_pad * 4 <= b128 * b128 * 5:
            return blk, b_pad
    return 128, b128


@functools.partial(jax.jit, static_argnames=("temperature",))
def multipos_con_loss(z_i, z_j, y, temperature=0.1, logit_scale=None):
    """Pallas forward of MultiPosConLoss.

    Args:
      z_i: [B, D] image embeddings (any float dtype; matmul runs in bf16).
      z_j: [B, D] text embeddings.
      y:   [B] integer labels (must fit int32).
      logit_scale: optional scalar (the learnable log-scale); defaults to log(1/T).
    Returns:
      dict with scalar 'loss' and 'img_txt_loss'.
    """
    B, D = z_i.shape
    blk, b_pad = _choose_tiles(B, D)
    n_i = b_pad // blk
    n_k = b_pad // blk
    padded = b_pad != B

    # exp(logit_scale) done once wrapper-side (single scalar op).
    if logit_scale is None:
        scale = jnp.full((1, 1), 1.0 / temperature, dtype=jnp.float32)
    else:
        scale = jnp.exp(jnp.asarray(logit_scale, jnp.float32)).reshape(1, 1)

    # bf16 operands for the MXU (f32 accumulation in-kernel); halves HBM traffic.
    zi = z_i.astype(jnp.bfloat16)
    zj = z_j.astype(jnp.bfloat16)
    y_i32 = y.astype(jnp.int32)
    if padded:
        pad = b_pad - B
        zi = jnp.pad(zi, ((0, pad), (0, 0)))
        zj = jnp.pad(zj, ((0, pad), (0, 0)))
        y_i32 = jnp.pad(y_i32, (0, pad))       # padded labels are validity-masked in-kernel

    y_col = y_i32.reshape(b_pad, 1)
    y_row = y_i32.reshape(n_k, 1, blk)

    kernel = functools.partial(_multipos_kernel, b_actual=B, padded=padded)

    colp, rowp = pl.pallas_call(
        kernel,
        out_shape=(jax.ShapeDtypeStruct((n_i, 1, b_pad), jnp.float32),
                   jax.ShapeDtypeStruct((n_i, 1, 1), jnp.float32)),
        grid_spec=pltpu.PrefetchScalarGridSpec(
            num_scalar_prefetch=0,
            grid=(n_i, n_k),
            in_specs=[
                pl.BlockSpec(memory_space=pltpu.SMEM),                    # scale (1,1) scalar
                pl.BlockSpec((blk, 1), lambda i, k: (i, 0)),              # y_col row tile
                pl.BlockSpec((n_k, 1, blk), lambda i, k: (0, 0, 0)),      # y_row, resident
                pl.BlockSpec((blk, D), lambda i, k: (i, 0)),              # z_i row tile
                pl.BlockSpec((blk, D), lambda i, k: (k, 0)),              # z_j col tile
            ],
            out_specs=[
                pl.BlockSpec((1, 1, blk), lambda i, k: (i, 0, k)),        # col-LSE partials
                pl.BlockSpec((1, 1, 1), lambda i, k: (i, 0, 0)),          # row-loss partials
            ],
            scratch_shapes=[pltpu.VMEM((blk, 1), jnp.float32)] * 4,       # max/se/pos/cnt
        ),
        compiler_params=pltpu.CompilerParams(
            # Row axis carries no cross-tile state anymore -> "parallel" (v7x megacore);
            # column axis carries the per-row-tile online stats -> "arbitrary".
            dimension_semantics=("parallel", "arbitrary"),
            vmem_limit_bytes=48 * 1024 * 1024,
        ),
    )(scale, y_col, y_row, zi, zj)

    # Tiny O(n_i * B) merge wrapper-side: logsumexp the per-row-tile column partials,
    # drop padded columns, and combine with the per-row-tile image-side partial sums.
    col_lse = jax.nn.logsumexp(colp.reshape(n_i, b_pad), axis=0)[:B]
    loss = (jnp.sum(rowp) + jnp.sum(col_lse)) / (2.0 * B)
    return {"loss": loss, "img_txt_loss": loss}


def _reference(z_i, z_j, y, temperature=0.1):
    """Pure-JAX reference (f32) for correctness checking."""
    zi = z_i.astype(jnp.float32)
    zj = z_j.astype(jnp.float32)
    scale = 1.0 / temperature
    logits_v = jnp.matmul(zi, zj.T, precision=jax.lax.Precision.HIGHEST) * scale
    logits_t = logits_v.T
    mask = (y[:, None] == y[None, :]).astype(jnp.float32)
    p = mask / jnp.clip(mask.sum(1, keepdims=True), 1.0, None)

    def soft_ce(logits, p):
        logp = jax.nn.log_softmax(logits, axis=1)
        return jnp.mean(-jnp.sum(p * logp, axis=1))

    return 0.5 * (soft_ce(logits_v, p) + soft_ce(logits_t, p))


if __name__ == "__main__":
    key = jax.random.PRNGKey(0)

    def make_inputs(b, d, kk):
        k1, k2, k3 = jax.random.split(kk, 3)
        zi = jax.random.normal(k1, (b, d), dtype=jnp.float32)
        zj = jax.random.normal(k2, (b, d), dtype=jnp.float32)
        zi = zi / jnp.linalg.norm(zi, axis=1, keepdims=True)
        zj = zj / jnp.linalg.norm(zj, axis=1, keepdims=True)
        # Kernel matmul runs in bf16; feed bf16 so the f32 reference sees identical
        # values and only accumulation-order differences remain.
        y = jax.random.randint(k3, (b,), 0, 8, dtype=jnp.int32)
        return zi.astype(jnp.bfloat16), zj.astype(jnp.bfloat16), y

    # (128, 32): tile-aligned path;  (96, 32): exercises the padding / validity-mask path.
    for b, d in ((128, 32), (96, 32)):
        z_i, z_j, y = make_inputs(b, d, jax.random.fold_in(key, b))
        out = multipos_con_loss(z_i, z_j, y, temperature=0.1)
        jax.block_until_ready(out)
        ref = _reference(z_i, z_j, y, temperature=0.1)
        assert jnp.allclose(out["loss"], ref, atol=2e-3, rtol=2e-3), (b, out["loss"], ref)
        assert jnp.allclose(out["img_txt_loss"], ref, atol=2e-3, rtol=2e-3)

    print("KERNEL_OK")
</pallas_src>

<mosaic_0001>
module attributes {stable_mosaic.version = 11 : i64} {
  func.func @_multipos_kernel(%arg0: i32, %arg1: i32, %arg2: memref<1x1xf32, #tpu.memory_space<smem>>, %arg3: memref<128x1xi32, #tpu.memory_space<vmem>>, %arg4: memref<1x1x128xi32, #tpu.memory_space<vmem>>, %arg5: memref<128x32xbf16, #tpu.memory_space<vmem>>, %arg6: memref<128x32xbf16, #tpu.memory_space<vmem>>, %arg7: memref<1x1x128xf32, #tpu.memory_space<vmem>>, %arg8: memref<1x1x1xf32, #tpu.memory_space<vmem>>, %arg9: memref<128x1xf32, #tpu.memory_space<vmem>>, %arg10: memref<128x1xf32, #tpu.memory_space<vmem>>, %arg11: memref<128x1xf32, #tpu.memory_space<vmem>>, %arg12: memref<128x1xf32, #tpu.memory_space<vmem>>) attributes {dimension_semantics = [#tpu.dimension_semantics<parallel>, #tpu.dimension_semantics<arbitrary>], iteration_bounds = array<i64: 1, 1>, scalar_prefetch = 0 : i64, scratch_operands = 4 : i64, tpu.core_type = #tpu.core_type<tc>, window_params = [{transform_indices = @transform_0, window_bounds = array<i64: 1, 1>}, {transform_indices = @transform_1, window_bounds = array<i64: 128, 1>}, {pipeline_mode = #tpu.pipeline_mode<synchronous>, transform_indices = @transform_2, window_bounds = array<i64: 1, 1, 128>}, {transform_indices = @transform_3, window_bounds = array<i64: 128, 32>}, {transform_indices = @transform_4, window_bounds = array<i64: 128, 32>}, {transform_indices = @transform_5, window_bounds = array<i64: 1, 1, 128>}, {transform_indices = @transform_6, window_bounds = array<i64: 1, 1, 1>}]} {
    %c0_i32 = arith.constant 0 : i32
    %0 = arith.cmpi eq, %arg1, %c0_i32 : i32
    %1 = arith.extui %0 : i1 to i32
    %c0_i32_0 = arith.constant 0 : i32
    %2 = arith.cmpi ne, %1, %c0_i32_0 : i32
    scf.if %2 {
      %cst_40 = arith.constant -1.000000e+30 : f32
      %67 = vector.broadcast %cst_40 : f32 to vector<128x1xf32>
      %c0_41 = arith.constant 0 : index
      %c0_42 = arith.constant 0 : index
      %68 = vector.load %arg9[%c0_41, %c0_42] : memref<128x1xf32, #tpu.memory_space<vmem>>, vector<128x1xf32>
      tpu.vector_store %arg9[%c0_41, %c0_42], %67 {strides = array<i32>} : memref<128x1xf32, #tpu.memory_space<vmem>>, vector<128x1xf32>,
      %cst_43 = arith.constant 0.000000e+00 : f32
      %69 = vector.broadcast %cst_43 : f32 to vector<128x1xf32>
      %c0_44 = arith.constant 0 : index
      %c0_45 = arith.constant 0 : index
      %70 = vector.load %arg10[%c0_44, %c0_45] : memref<128x1xf32, #tpu.memory_space<vmem>>, vector<128x1xf32>
      tpu.vector_store %arg10[%c0_44, %c0_45], %69 {strides = array<i32>} : memref<128x1xf32, #tpu.memory_space<vmem>>, vector<128x1xf32>,
      %cst_46 = arith.constant 0.000000e+00 : f32
      %71 = vector.broadcast %cst_46 : f32 to vector<128x1xf32>
      %c0_47 = arith.constant 0 : index
      %c0_48 = arith.constant 0 : index
      %72 = vector.load %arg11[%c0_47, %c0_48] : memref<128x1xf32, #tpu.memory_space<vmem>>, vector<128x1xf32>
      tpu.vector_store %arg11[%c0_47, %c0_48], %71 {strides = array<i32>} : memref<128x1xf32, #tpu.memory_space<vmem>>, vector<128x1xf32>,
      %cst_49 = arith.constant 0.000000e+00 : f32
      %73 = vector.broadcast %cst_49 : f32 to vector<128x1xf32>
      %c0_50 = arith.constant 0 : index
      %c0_51 = arith.constant 0 : index
      %74 = vector.load %arg12[%c0_50, %c0_51] : memref<128x1xf32, #tpu.memory_space<vmem>>, vector<128x1xf32>
      tpu.vector_store %arg12[%c0_50, %c0_51], %73 {strides = array<i32>} : memref<128x1xf32, #tpu.memory_space<vmem>>, vector<128x1xf32>,
    } else {
    }
    %c0 = arith.constant 0 : index
    %c0_1 = arith.constant 0 : index
    %3 = memref.load %arg2[%c0, %c0_1] : memref<1x1xf32, #tpu.memory_space<smem>>
    %c0_2 = arith.constant 0 : index
    %c0_3 = arith.constant 0 : index
    %4 = vector.load %arg5[%c0_2, %c0_3] : memref<128x32xbf16, #tpu.memory_space<vmem>>, vector<128x32xbf16>
    %c0_4 = arith.constant 0 : index
    %c0_5 = arith.constant 0 : index
    %5 = vector.load %arg6[%c0_4, %c0_5] : memref<128x32xbf16, #tpu.memory_space<vmem>>, vector<128x32xbf16>
    %cst = arith.constant dense<0.000000e+00> : vector<128x128xf32>
    %6 = tpu.matmul %4, %5, %cst {dimension_numbers = #tpu.dot_dimension_numbers<[1], [1], [0], [0], [0, 0, 1, 0], [], []>} : vector<128x32xbf16>, vector<128x32xbf16>, vector<128x128xf32> -> vector<128x128xf32>
    %7 = vector.broadcast %3 : f32 to vector<128x128xf32>
    %8 = arith.mulf %6, %7 : vector<128x128xf32>
    %c0_6 = arith.constant 0 : index
    %c0_7 = arith.constant 0 : index
    %9 = vector.load %arg3[%c0_6, %c0_7] : memref<128x1xi32, #tpu.memory_space<vmem>>, vector<128x1xi32>
    %10 = arith.index_cast %arg1 : i32 to index
    %c0_8 = arith.constant 0 : index
    %c0_9 = arith.constant 0 : index
    %11 = vector.load %arg4[%10, %c0_8, %c0_9] : memref<1x1x128xi32, #tpu.memory_space<vmem>>, vector<1x1x128xi32>
    %12 = vector.shape_cast %11 : vector<1x1x128xi32> to vector<1x128xi32>
    %13 = vector.broadcast %9 : vector<128x1xi32> to vector<128x128xi32>
    %14 = vector.broadcast %12 : vector<1x128xi32> to vector<128x128xi32>
    %15 = arith.cmpi eq, %13, %14 : vector<128x128xi32>
    %16 = arith.extui %15 : vector<128x128xi1> to vector<128x128xi32>
    %17 = arith.sitofp %16 : vector<128x128xi32> to vector<128x128xf32>
    %cst_10 = arith.constant dense<0xFF800000> : vector<128xf32>
    %18 = vector.multi_reduction <maximumf>, %8, %cst_10 [1] : vector<128x128xf32> to vector<128xf32>
    %19 = vector.shape_cast %18 : vector<128xf32> to vector<128x1xf32>
    %c0_11 = arith.constant 0 : index
    %c0_12 = arith.constant 0 : index
    %20 = vector.load %arg9[%c0_11, %c0_12] : memref<128x1xf32, #tpu.memory_space<vmem>>, vector<128x1xf32>
    %21 = arith.maximumf %20, %19 : vector<128x1xf32>
    %c0_13 = arith.constant 0 : index
    %c0_14 = arith.constant 0 : index
    %22 = vector.load %arg9[%c0_13, %c0_14] : memref<128x1xf32, #tpu.memory_space<vmem>>, vector<128x1xf32>
    %23 = arith.subf %22, %21 : vector<128x1xf32>
    %24 = math.exp %23 : vector<128x1xf32>
    %25 = vector.broadcast %21 : vector<128x1xf32> to vector<128x128xf32>
    %26 = arith.subf %8, %25 : vector<128x128xf32>
    %27 = math.exp %26 : vector<128x128xf32>
    %c0_15 = arith.constant 0 : index
    %c0_16 = arith.constant 0 : index
    %28 = vector.load %arg10[%c0_15, %c0_16] : memref<128x1xf32, #tpu.memory_space<vmem>>, vector<128x1xf32>
    %29 = arith.mulf %28, %24 : vector<128x1xf32>
    %cst_17 = arith.constant dense<0.000000e+00> : vector<128xf32>
    %30 = vector.multi_reduction <add>, %27, %cst_17 [1] : vector<128x128xf32> to vector<128xf32>
    %31 = vector.shape_cast %30 : vector<128xf32> to vector<128x1xf32>
    %32 = arith.addf %29, %31 : vector<128x1xf32>
    %c0_18 = arith.constant 0 : index
    %c0_19 = arith.constant 0 : index
    %33 = vector.load %arg10[%c0_18, %c0_19] : memref<128x1xf32, #tpu.memory_space<vmem>>, vector<128x1xf32>
    tpu.vector_store %arg10[%c0_18, %c0_19], %32 {strides = array<i32>} : memref<128x1xf32, #tpu.memory_space<vmem>>, vector<128x1xf32>,
    %c0_20 = arith.constant 0 : index
    %c0_21 = arith.constant 0 : index
    %34 = vector.load %arg11[%c0_20, %c0_21] : memref<128x1xf32, #tpu.memory_space<vmem>>, vector<128x1xf32>
    %35 = arith.mulf %17, %8 : vector<128x128xf32>
    %cst_22 = arith.constant dense<0.000000e+00> : vector<128xf32>
    %36 = vector.multi_reduction <add>, %35, %cst_22 [1] : vector<128x128xf32> to vector<128xf32>
    %37 = vector.shape_cast %36 : vector<128xf32> to vector<128x1xf32>
    %38 = arith.addf %34, %37 : vector<128x1xf32>
    %c0_23 = arith.constant 0 : index
    %c0_24 = arith.constant 0 : index
    %39 = vector.load %arg11[%c0_23, %c0_24] : memref<128x1xf32, #tpu.memory_space<vmem>>, vector<128x1xf32>
    tpu.vector_store %arg11[%c0_23, %c0_24], %38 {strides = array<i32>} : memref<128x1xf32, #tpu.memory_space<vmem>>, vector<128x1xf32>,
    %c0_25 = arith.constant 0 : index
    %c0_26 = arith.constant 0 : index
    %40 = vector.load %arg12[%c0_25, %c0_26] : memref<128x1xf32, #tpu.memory_space<vmem>>, vector<128x1xf32>
    %cst_27 = arith.constant dense<0.000000e+00> : vector<128xf32>
    %41 = vector.multi_reduction <add>, %17, %cst_27 [1] : vector<128x128xf32> to vector<128xf32>
    %42 = vector.shape_cast %41 : vector<128xf32> to vector<128x1xf32>
    %43 = arith.addf %40, %42 : vector<128x1xf32>
    %c0_28 = arith.constant 0 : index
    %c0_29 = arith.constant 0 : index
    %44 = vector.load %arg12[%c0_28, %c0_29] : memref<128x1xf32, #tpu.memory_space<vmem>>, vector<128x1xf32>
    tpu.vector_store %arg12[%c0_28, %c0_29], %43 {strides = array<i32>} : memref<128x1xf32, #tpu.memory_space<vmem>>, vector<128x1xf32>,
    %c0_30 = arith.constant 0 : index
    %c0_31 = arith.constant 0 : index
    %45 = vector.load %arg9[%c0_30, %c0_31] : memref<128x1xf32, #tpu.memory_space<vmem>>, vector<128x1xf32>
    tpu.vector_store %arg9[%c0_30, %c0_31], %21 {strides = array<i32>} : memref<128x1xf32, #tpu.memory_space<vmem>>, vector<128x1xf32>,
    %46 = vector.shape_cast %21 : vector<128x1xf32> to vector<1x128x1xf32>
    %cst_32 = arith.constant dense<0xFF800000> : vector<1xf32>
    %47 = vector.multi_reduction <maximumf>, %46, %cst_32 [1, 2] : vector<1x128x1xf32> to vector<1xf32>
    %48 = vector.shape_cast %47 : vector<1xf32> to vector<1x1x1xf32>
    %49 = vector.extract %48[0, 0, 0] : f32 from vector<1x1x1xf32>
    %50 = vector.broadcast %49 : f32 to vector<128x1xf32>
    %51 = arith.subf %21, %50 : vector<128x1xf32>
    %52 = math.exp %51 : vector<128x1xf32>
    %53 = vector.broadcast %52 : vector<128x1xf32> to vector<128x128xf32>
    %54 = arith.mulf %27, %53 : vector<128x128xf32>
    %cst_33 = arith.constant dense<0.000000e+00> : vector<128xf32>
    %55 = vector.multi_reduction <add>, %54, %cst_33 [0] : vector<128x128xf32> to vector<128xf32>
    %56 = vector.shape_cast %55 : vector<128xf32> to vector<1x128xf32>
    %cst_34 = arith.constant 9.99999991E-38 : f32
    %57 = vector.broadcast %cst_34 : f32 to vector<1x128xf32>
    %58 = arith.maximumf %56, %57 : vector<1x128xf32>
    %59 = math.log %58 : vector<1x128xf32>
    %60 = vector.broadcast %49 : f32 to vector<1x128xf32>
    %61 = arith.addf %60, %59 : vector<1x128xf32>
    %62 = vector.shape_cast %61 : vector<1x128xf32> to vector<1x1x128xf32>
    %c0_35 = arith.constant 0 : index
    %c0_36 = arith.constant 0 : index
    %c0_37 = arith.constant 0 : index
    %63 = vector.load %arg7[%c0_35, %c0_36, %c0_37] : memref<1x1x128xf32, #tpu.memory_space<vmem>>, vector<1x1x128xf32>
    tpu.vector_store %arg7[%c0_35, %c0_36, %c0_37], %62 {strides = array<i32>} : memref<1x1x128xf32, #tpu.memory_space<vmem>>, vector<1x1x128xf32>,
    %c0_i32_38 = arith.constant 0 : i32
    %64 = arith.cmpi eq, %arg1, %c0_i32_38 : i32
    %65 = arith.extui %64 : i1 to i32
    %c0_i32_39 = arith.constant 0 : i32
    %66 = arith.cmpi ne, %65, %c0_i32_39 : i32
    scf.if %66 {
      %c0_40 = arith.constant 0 : index
      %c0_41 = arith.constant 0 : index
      %67 = vector.load %arg9[%c0_40, %c0_41] : memref<128x1xf32, #tpu.memory_space<vmem>>, vector<128x1xf32>
      %c0_42 = arith.constant 0 : index
      %c0_43 = arith.constant 0 : index
      %68 = vector.load %arg10[%c0_42, %c0_43] : memref<128x1xf32, #tpu.memory_space<vmem>>, vector<128x1xf32>
      %69 = math.log %68 : vector<128x1xf32>
      %70 = arith.addf %67, %69 : vector<128x1xf32>
      %c0_44 = arith.constant 0 : index
      %c0_45 = arith.constant 0 : index
      %71 = vector.load %arg11[%c0_44, %c0_45] : memref<128x1xf32, #tpu.memory_space<vmem>>, vector<128x1xf32>
      %c0_46 = arith.constant 0 : index
      %c0_47 = arith.constant 0 : index
      %72 = vector.load %arg12[%c0_46, %c0_47] : memref<128x1xf32, #tpu.memory_space<vmem>>, vector<128x1xf32>
      %cst_48 = arith.constant 1.000000e+00 : f32
      %73 = vector.broadcast %cst_48 : f32 to vector<128x1xf32>
      %74 = arith.maximumf %72, %73 : vector<128x1xf32>
      %75 = arith.divf %71, %74 : vector<128x1xf32>
      %cst_49 = arith.constant 2.000000e+00 : f32
      %76 = vector.broadcast %cst_49 : f32 to vector<128x1xf32>
      %77 = arith.mulf %76, %75 : vector<128x1xf32>
      %78 = arith.subf %70, %77 : vector<128x1xf32>
      %79 = vector.shape_cast %78 : vector<128x1xf32> to vector<1x128x1xf32>
      %cst_50 = arith.constant dense<0.000000e+00> : vector<1xf32>
      %80 = vector.multi_reduction <add>, %79, %cst_50 [1, 2] : vector<1x128x1xf32> to vector<1xf32>
      %81 = vector.shape_cast %80 : vector<1xf32> to vector<1x1x1xf32>
      %82 = vector.extract %81[0, 0, 0] : f32 from vector<1x1x1xf32>
      %83 = vector.broadcast %82 : f32 to vector<1x1xf32>
      %84 = vector.shape_cast %83 : vector<1x1xf32> to vector<1x1x1xf32>
      %c0_51 = arith.constant 0 : index
      %c0_52 = arith.constant 0 : index
      %c0_53 = arith.constant 0 : index
      %85 = vector.load %arg8[%c0_51, %c0_52, %c0_53] : memref<1x1x1xf32, #tpu.memory_space<vmem>>, vector<1x1x1xf32>
      tpu.vector_store %arg8[%c0_51, %c0_52, %c0_53], %84 {strides = array<i32>} : memref<1x1x1xf32, #tpu.memory_space<vmem>>, vector<1x1x1xf32>,
    } else {
    }
    return
  }
  func.func @transform_0(%arg0: i32, %arg1: i32) -> (i32, i32) {
    %c0_i32 = arith.constant 0 : i32
    %c0_i32_0 = arith.constant 0 : i32
    %c0_i32_1 = arith.constant 0 : i32
    return %c0_i32, %c0_i32_0 : i32, i32
  }
  func.func @transform_1(%arg0: i32, %arg1: i32) -> (i32, i32) {
    %c0_i32 = arith.constant 0 : i32
    %c0_i32_0 = arith.constant 0 : i32
    return %arg0, %c0_i32 : i32, i32
  }
  func.func @transform_2(%arg0: i32, %arg1: i32) -> (i32, i32, i32) {
    %c0_i32 = arith.constant 0 : i32
    %c0_i32_0 = arith.constant 0 : i32
    %c0_i32_1 = arith.constant 0 : i32
    %c0_i32_2 = arith.constant 0 : i32
    return %c0_i32, %c0_i32_0, %c0_i32_1 : i32, i32, i32
  }
  func.func @transform_3(%arg0: i32, %arg1: i32) -> (i32, i32) {
    %c0_i32 = arith.constant 0 : i32
    %c0_i32_0 = arith.constant 0 : i32
    return %arg0, %c0_i32 : i32, i32
  }
  func.func @transform_4(%arg0: i32, %arg1: i32) -> (i32, i32) {
    %c0_i32 = arith.constant 0 : i32
    %c0_i32_0 = arith.constant 0 : i32
    return %arg1, %c0_i32 : i32, i32
  }
  func.func @transform_5(%arg0: i32, %arg1: i32) -> (i32, i32, i32) {
    %c0_i32 = arith.constant 0 : i32
    %c0_i32_0 = arith.constant 0 : i32
    return %arg0, %c0_i32, %arg1 : i32, i32, i32
  }
  func.func @transform_6(%arg0: i32, %arg1: i32) -> (i32, i32, i32) {
    %c0_i32 = arith.constant 0 : i32
    %c0_i32_0 = arith.constant 0 : i32
    %c0_i32_1 = arith.constant 0 : i32
    return %arg0, %c0_i32, %c0_i32_0 : i32, i32, i32
  }
}

</mosaic_0001>

<bundles_post_ra>
// kernel: multipos_con_loss.1
= control target key start
LH: loop header
LB: loop body
LE: loop exit
PB: predicated region body
PF: predicated region fallthrough
CT: control target
= control target key end

     0   :  { %vm207_vm0 = vcmask 261120   ;;  %v1816_v3 = vmov 0   ;;  %s2708_s0 = inlined_call_operand.<no memory space> [shape: f32[1,1], index: 0, kind: input, shape index: {}]   ;;  %s2709_s1 = inlined_call_operand.vmem [shape: s32[128,1], index: 1, kind: input, shape index: {}]   ;;  %s2710_s2 = inlined_call_operand.vmem [shape: s32[1,1,128], index: 2, kind: input, shape index: {}]   ;;  %s2711_s3 = inlined_call_operand.vmem [shape: bf16[128,32], index: 3, kind: input, shape index: {}]   ;;  %s2712_s4 = inlined_call_operand.vmem [shape: bf16[128,32], index: 4, kind: input, shape index: {}]   ;;  %s2713_s5 = inlined_call_operand.vmem [shape: f32[1,1,128], index: 5, kind: output, shape index: {0}]   ;;  %s2714_s6 = inlined_call_operand.hbm [shape: f32[1,1,1], index: 6, kind: output, shape index: {1}]  }
   0x1   :  { %v1614_v0 = vld [vmem:[%s2712_s4] sm:$0xff]   ;;  %v1615_v1 = vld [vmem:[%s2712_s4 + $0x8] sm:$0xff]   ;;  %1613 = vset.pattern.permute.xlu1 %v1816_v3  ;;  %1612 = vset.pattern.permute.xlu0 %v1816_v3  ;;  %v1616_v4 = vld [vmem:[%s2712_s4 + $0x10] sm:$0xff]  }
   0x2   :  { %1588 = vmatprep.subr.msk.bf16.mxu0 %vm207_vm0, %v1614_v0  ;;  %1589 = vmatprep.subr.msk.bf16.mxu1 %vm207_vm0, %v1614_v0  ;;  %v233_v2 = vsel %vm207_vm0, %v1614_v0, 0  ;;  %v236_v5 = vsel %vm207_vm0, %v1615_v1, 0  ;;  %v1622_v6 = vld [vmem:[%s2711_s3] sm:$0xff]   ;;  %v239_v8 = vsel %vm207_vm0, %v1616_v4, 0  ;;  %v1617_v9 = vld [vmem:[%s2712_s4 + $0x18] sm:$0xff]   ;;  %v371_v10 = vld [vmem:[%s2709_s1 + $0x8] sm:$0xff] }
   0x3   :  { %1541 = vmatpush3.bf16.xpose.msra.mxu0 %v233_v2  ;;  %1580 = vmatpush3.bf16.xpose.msra.mxu1 %v233_v2  ;;  %v1623_v7 = vld [vmem:[%s2711_s3 + $0x20] sm:$0xff]   ;;  %v372_v11 = vld [vmem:[%s2709_s1 + $0x10] sm:$0xff] }
   0x4   :  { %1590 = vmatprep.subr.msk.bf16.mxu0 %vm207_vm0, %v1615_v1  ;;  %1591 = vmatprep.subr.msk.bf16.mxu1 %vm207_vm0, %v1615_v1  ;;  %v370_v12 = vld [vmem:[%s2709_s1] sm:$0xff] }
   0x5   :  { %1556 = vmatprep.mubr.msk.bf16.mxu0 %vm207_vm0, %v1622_v6  ;;  %1564 = vmatprep.mubr.msk.bf16.mxu1 %vm207_vm0, %v1623_v7 }
   0x6   :  { %391 = vperm.xlu1 %1613, %v371_v10  }
   0xb   :  { %1543 = vmatpush3.bf16.xpose.msra.mxu0 %v236_v5  ;;  %1581 = vmatpush3.bf16.xpose.msra.mxu1 %v236_v5 }
   0xc   :  { %1592 = vmatprep.subr.msk.bf16.mxu0 %vm207_vm0, %v1616_v4  ;;  %1593 = vmatprep.subr.msk.bf16.mxu1 %vm207_vm0, %v1616_v4 }
  0x13   :  { %1545 = vmatpush3.bf16.xpose.msra.mxu0 %v239_v8  ;;  %1582 = vmatpush3.bf16.xpose.msra.mxu1 %v239_v8 }
  0x14   :  { %1594 = vmatprep.subr.msk.bf16.mxu0 %vm207_vm0, %v1617_v9  ;;  %1595 = vmatprep.subr.msk.bf16.mxu1 %vm207_vm0, %v1617_v9 }
  0x15   :  { %13 = vsyncpa [#allocation8], 0  ;;  %394 = vperm.xlu1 %1613, %v372_v11   ;;  %388 = vperm.xlu0 %1612, %v370_v12   ;;  %v373_v13 = vld [vmem:[%s2709_s1 + $0x18] sm:$0xff]  ;;  %v242_v14 = vsel %vm207_vm0, %v1617_v9, 0  ;;  %v1618_v15 = vld [vmem:[%s2712_s4 + $0x20] sm:$0xff]   ;;  %v1976_v38 = vstv %s2708_s0  ;;  %vm29_vm1 = vcmask 7168  }
  0x16   :  { %v374_v16 = vld [vmem:[%s2709_s1 + $0x20] sm:$0xff]  ;;  %v375_v17 = vld [vmem:[%s2709_s1 + $0x28] sm:$0xff]  ;;  %v245_v18 = vsel %vm207_vm0, %v1618_v15, 0  ;;  %v376_v20 = vld [vmem:[%s2709_s1 + $0x30] sm:$0xff]  ;;  %v1817_v59 = vmov -1e+30  }
  0x17   :  { %v1619_v19 = vld [vmem:[%s2712_s4 + $0x28] sm:$0xff]   ;;  %v377_v21 = vld [vmem:[%s2709_s1 + $0x38] sm:$0xff]  ;;  %v1620_v23 = vld [vmem:[%s2712_s4 + $0x30] sm:$0xff]   ;;  %40 = vst.msk [vmem:[#allocation2 + $0x50] sm:$0xff] %vm29_vm1, %v1817_v59  ;;  %v2715_v60 = vmov 0.0   ;;  %s1819_s15 = smov [#allocation7]  }
  0x18   :  { %v248_v22 = vsel %vm207_vm0, %v1619_v19, 0  ;;  %v378_v24 = vld [vmem:[%s2709_s1 + $0x40] sm:$0xff]  ;;  %v379_v25 = vld [vmem:[%s2709_s1 + $0x48] sm:$0xff]  ;;  %v251_v26 = vsel %vm207_vm0, %v1620_v23, 0  ;;  %v1621_v27 = vld [vmem:[%s2712_s4 + $0x38] sm:$0xff]   ;;  %30 = vst.msk [vmem:[#allocation2] sm:$0xff] %vm29_vm1, %v1817_v59 }
  0x19   :  { %397 = vperm.xlu1 %1613, %v373_v13   ;;  %v380_v28 = vld [vmem:[%s2709_s1 + $0x50] sm:$0xff]  ;;  %v382_v29 = vld [vmem:[%s2709_s1 + $0x60] sm:$0xff]  ;;  %v254_v30 = vsel %vm207_vm0, %v1621_v27, 0  ;;  %v1624_v31 = vld [vmem:[%s2711_s3 + $0x8] sm:$0xff]   ;;  %31 = vst.msk [vmem:[#allocation2 + $0x8] sm:$0xff] %vm29_vm1, %v1817_v59  ;;  %s1473_s16 = sshll.u32 %s1819_s15, 4  ;;  %s1474_s16 = int_to_ptr.vmem [resolvable:$true] %s1473_s16 }
  0x1a   :  { %v1625_v32 = vld [vmem:[%s2711_s3 + $0x28] sm:$0xff]   ;;  %v1626_v33 = vld [vmem:[%s2711_s3 + $0x10] sm:$0xff]   ;;  %v1627_v35 = vld [vmem:[%s2711_s3 + $0x18] sm:$0xff]   ;;  %32 = vst.msk [vmem:[#allocation2 + $0x10] sm:$0xff] %vm29_vm1, %v1817_v59  ;;  %s1792_s17 = scalar_lea.vmem %s1474_s16, 16  ;;  %s1796_s18 = scalar_lea.vmem %s1474_s16, 32 }
  0x1b   :  { %1547 = vmatpush3.bf16.xpose.msra.mxu0 %v242_v14  ;;  %1583 = vmatpush3.bf16.xpose.msra.mxu1 %v242_v14  ;;  %v1628_v34 = vld [vmem:[%s2711_s3 + $0x30] sm:$0xff]   ;;  %v1629_v36 = vld [vmem:[%s2711_s3 + $0x38] sm:$0xff]   ;;  %33 = vst.msk [vmem:[#allocation2 + $0x18] sm:$0xff] %vm29_vm1, %v1817_v59  ;;  %34 = vst.msk [vmem:[#allocation2 + $0x20] sm:$0xff] %vm29_vm1, %v1817_v59  ;;  %p1793_p0 = scmp.ne.s32.totalorder %s1474_s16, %s1792_s17  ;;  %p1797_p1 = scmp.lt.s32.totalorder %s1474_s16, %s1474_s16 }
  0x1c   :  { %1596 = vmatprep.subr.msk.bf16.mxu0 %vm207_vm0, %v1618_v15  ;;  %1597 = vmatprep.subr.msk.bf16.mxu1 %vm207_vm0, %v1618_v15  ;;  %35 = vst.msk [vmem:[#allocation2 + $0x28] sm:$0xff] %vm29_vm1, %v1817_v59  ;;  %36 = vst.msk [vmem:[#allocation2 + $0x30] sm:$0xff] %vm29_vm1, %v1817_v59  ;;  %v2181_v13 = vld [vmem:[%s2710_s2] ss:$0 sm:$0xff]  ;;  %p1798_p2 = scmp.lt.s32.totalorder %s1796_s18, %s1792_s17 }
  0x1d   :  { %400 = vperm.xlu1 %1613, %v374_v16   ;;  %37 = vst.msk [vmem:[#allocation2 + $0x38] sm:$0xff] %vm29_vm1, %v1817_v59  ;;  %38 = vst.msk [vmem:[#allocation2 + $0x40] sm:$0xff] %vm29_vm1, %v1817_v59 }
  0x1e   :  { %39 = vst.msk [vmem:[#allocation2 + $0x48] sm:$0xff] %vm29_vm1, %v1817_v59  ;;  %41 = vst.msk [vmem:[#allocation2 + $0x58] sm:$0xff] %vm29_vm1, %v1817_v59  ;;  %p1799_p3 = por %p1798_p2, %p1797_p1 }
  0x1f   :  { %42 = vst.msk [vmem:[#allocation2 + $0x60] sm:$0xff] %vm29_vm1, %v1817_v59  ;;  %43 = vst.msk [vmem:[#allocation2 + $0x68] sm:$0xff] %vm29_vm1, %v1817_v59 }
  0x20   :  { %44 = vst.msk [vmem:[#allocation2 + $0x70] sm:$0xff] %vm29_vm1, %v1817_v59  ;;  %45 = vst.msk [vmem:[#allocation2 + $0x78] sm:$0xff] %vm29_vm1, %v1817_v59  ;;  %p1800_p4 = pnand %p1799_p3, %p1793_p0 }
  0x21   :  { %403 = vperm.xlu1 %1613, %v375_v17   ;;  %46 = vst.msk [vmem:[#allocation3] sm:$0xff] %vm29_vm1, %v2715_v60  ;;  %47 = vst.msk [vmem:[#allocation3 + $0x8] sm:$0xff] %vm29_vm1, %v2715_v60 }
  0x22   :  { %48 = vst.msk [vmem:[#allocation3 + $0x10] sm:$0xff] %vm29_vm1, %v2715_v60  ;;  %49 = vst.msk [vmem:[#allocation3 + $0x18] sm:$0xff] %vm29_vm1, %v2715_v60 }
  0x23   :  { %1549 = vmatpush3.bf16.xpose.msra.mxu0 %v245_v18  ;;  %1584 = vmatpush3.bf16.xpose.msra.mxu1 %v245_v18  ;;  %50 = vst.msk [vmem:[#allocation3 + $0x20] sm:$0xff] %vm29_vm1, %v2715_v60  ;;  %51 = vst.msk [vmem:[#allocation3 + $0x28] sm:$0xff] %vm29_vm1, %v2715_v60  ;;  %v2274_v59 = vld [vmem:[#allocation2 + $0x30] sm:$0xff] }
  0x24   :  { %1598 = vmatprep.subr.msk.bf16.mxu0 %vm207_vm0, %v1619_v19  ;;  %1599 = vmatprep.subr.msk.bf16.mxu1 %vm207_vm0, %v1619_v19  ;;  %52 = vst.msk [vmem:[#allocation3 + $0x30] sm:$0xff] %vm29_vm1, %v2715_v60  ;;  %53 = vst.msk [vmem:[#allocation3 + $0x38] sm:$0xff] %vm29_vm1, %v2715_v60 }
  0x25   :  { %406 = vperm.xlu1 %1613, %v376_v20   ;;  %54 = vst.msk [vmem:[#allocation3 + $0x40] sm:$0xff] %vm29_vm1, %v2715_v60  ;;  %55 = vst.msk [vmem:[#allocation3 + $0x48] sm:$0xff] %vm29_vm1, %v2715_v60 }
  0x26   :  { %56 = vst.msk [vmem:[#allocation3 + $0x50] sm:$0xff] %vm29_vm1, %v2715_v60  ;;  %57 = vst.msk [vmem:[#allocation3 + $0x58] sm:$0xff] %vm29_vm1, %v2715_v60 }
  0x27   :  { %58 = vst.msk [vmem:[#allocation3 + $0x60] sm:$0xff] %vm29_vm1, %v2715_v60  ;;  %59 = vst.msk [vmem:[#allocation3 + $0x68] sm:$0xff] %vm29_vm1, %v2715_v60 }
  0x28   :  { %60 = vst.msk [vmem:[#allocation3 + $0x70] sm:$0xff] %vm29_vm1, %v2715_v60  ;;  %61 = vst.msk [vmem:[#allocation3 + $0x78] sm:$0xff] %vm29_vm1, %v2715_v60 }
  0x29   :  { %409 = vperm.xlu1 %1613, %v377_v21   ;;  %62 = vst.msk [vmem:[#allocation4] sm:$0xff] %vm29_vm1, %v2715_v60  ;;  %63 = vst.msk [vmem:[#allocation4 + $0x8] sm:$0xff] %vm29_vm1, %v2715_v60  ;;  %v384_v21 = vld [vmem:[%s2709_s1 + $0x70] sm:$0xff] }
  0x2a   :  { %64 = vst.msk [vmem:[#allocation4 + $0x10] sm:$0xff] %vm29_vm1, %v2715_v60  ;;  %65 = vst.msk [vmem:[#allocation4 + $0x18] sm:$0xff] %vm29_vm1, %v2715_v60 }
  0x2b   :  { %1551 = vmatpush3.bf16.xpose.msra.mxu0 %v248_v22  ;;  %1585 = vmatpush3.bf16.xpose.msra.mxu1 %v248_v22  ;;  %66 = vst.msk [vmem:[#allocation4 + $0x20] sm:$0xff] %vm29_vm1, %v2715_v60  ;;  %67 = vst.msk [vmem:[#allocation4 + $0x28] sm:$0xff] %vm29_vm1, %v2715_v60 }
  0x2c   :  { %1600 = vmatprep.subr.msk.bf16.mxu0 %vm207_vm0, %v1620_v23  ;;  %1601 = vmatprep.subr.msk.bf16.mxu1 %vm207_vm0, %v1620_v23  ;;  %68 = vst.msk [vmem:[#allocation4 + $0x30] sm:$0xff] %vm29_vm1, %v2715_v60  ;;  %69 = vst.msk [vmem:[#allocation4 + $0x38] sm:$0xff] %vm29_vm1, %v2715_v60 }
  0x2d   :  { %412 = vperm.xlu1 %1613, %v378_v24   ;;  %70 = vst.msk [vmem:[#allocation4 + $0x40] sm:$0xff] %vm29_vm1, %v2715_v60  ;;  %71 = vst.msk [vmem:[#allocation4 + $0x48] sm:$0xff] %vm29_vm1, %v2715_v60 }
  0x2e   :  { %72 = vst.msk [vmem:[#allocation4 + $0x50] sm:$0xff] %vm29_vm1, %v2715_v60  ;;  %73 = vst.msk [vmem:[#allocation4 + $0x58] sm:$0xff] %vm29_vm1, %v2715_v60 }
  0x2f   :  { %74 = vst.msk [vmem:[#allocation4 + $0x60] sm:$0xff] %vm29_vm1, %v2715_v60  ;;  %75 = vst.msk [vmem:[#allocation4 + $0x68] sm:$0xff] %vm29_vm1, %v2715_v60 }
  0x30   :  { %76 = vst.msk [vmem:[#allocation4 + $0x70] sm:$0xff] %vm29_vm1, %v2715_v60  ;;  %77 = vst.msk [vmem:[#allocation4 + $0x78] sm:$0xff] %vm29_vm1, %v2715_v60 }
  0x31   :  { %415 = vperm.xlu1 %1613, %v379_v25   ;;  %78 = vst.msk [vmem:[#allocation5] sm:$0xff] %vm29_vm1, %v2715_v60  ;;  %79 = vst.msk [vmem:[#allocation5 + $0x8] sm:$0xff] %vm29_vm1, %v2715_v60 }
  0x32   :  { %80 = vst.msk [vmem:[#allocation5 + $0x10] sm:$0xff] %vm29_vm1, %v2715_v60  ;;  %81 = vst.msk [vmem:[#allocation5 + $0x18] sm:$0xff] %vm29_vm1, %v2715_v60 }
  0x33   :  { %1553 = vmatpush3.bf16.xpose.msra.mxu0 %v251_v26  ;;  %1586 = vmatpush3.bf16.xpose.msra.mxu1 %v251_v26  ;;  %82 = vst.msk [vmem:[#allocation5 + $0x20] sm:$0xff] %vm29_vm1, %v2715_v60  ;;  %83 = vst.msk [vmem:[#allocation5 + $0x28] sm:$0xff] %vm29_vm1, %v2715_v60 }
  0x34   :  { %1602 = vmatprep.subr.msk.bf16.mxu0 %vm207_vm0, %v1621_v27  ;;  %1603 = vmatprep.subr.msk.bf16.mxu1 %vm207_vm0, %v1621_v27  ;;  %84 = vst.msk [vmem:[#allocation5 + $0x30] sm:$0xff] %vm29_vm1, %v2715_v60  ;;  %85 = vst.msk [vmem:[#allocation5 + $0x38] sm:$0xff] %vm29_vm1, %v2715_v60 }
  0x35   :  { %418 = vperm.xlu1 %1613, %v380_v28   ;;  %86 = vst.msk [vmem:[#allocation5 + $0x40] sm:$0xff] %vm29_vm1, %v2715_v60  ;;  %87 = vst.msk [vmem:[#allocation5 + $0x48] sm:$0xff] %vm29_vm1, %v2715_v60  ;;  %v2219_v28 = vld [vmem:[#allocation2 + $0x50] sm:$0xff] }
  0x36   :  { %88 = vst.msk [vmem:[#allocation5 + $0x50] sm:$0xff] %vm29_vm1, %v2715_v60  ;;  %89 = vst.msk [vmem:[#allocation5 + $0x58] sm:$0xff] %vm29_vm1, %v2715_v60 }
  0x37   :  { %90 = vst.msk [vmem:[#allocation5 + $0x60] sm:$0xff] %vm29_vm1, %v2715_v60  ;;  %91 = vst.msk [vmem:[#allocation5 + $0x68] sm:$0xff] %vm29_vm1, %v2715_v60 }
  0x38   :  { %92 = vst.msk [vmem:[#allocation5 + $0x70] sm:$0xff] %vm29_vm1, %v2715_v60  ;;  %93 = vst.msk [vmem:[#allocation5 + $0x78] sm:$0xff] %vm29_vm1, %v2715_v60 }
  0x39   :  { %424 = vperm.xlu1 %1613, %v382_v29   ;;  %v2221_v29 = vld [vmem:[#allocation2 + $0x10] sm:$0xff]  ;;  %2743 = vst [vmem:[#allocation12_spill] sm:$0xff] %v2274_v59 }
  0x3b   :  { %1555 = vmatpush3.bf16.xpose.msra.mxu0 %v254_v30  ;;  %1587 = vmatpush3.bf16.xpose.msra.mxu1 %v254_v30 }
  0x42   :  { %1557 = vmatmul.mubr.msk.bf16.vlgmr.msra.gmra.mrb[0].mxu0 %vm207_vm0, %v1624_v31  ;;  %1565 = vmatmul.mubr.msk.bf16.vlgmr.msra.gmra.mrb[0].mxu1 %vm207_vm0, %v1625_v32 }
  0x43   :  { %1560 = vmatprep.mubr.msk.bf16.mxu0 %vm207_vm0, %v1626_v33  ;;  %1568 = vmatprep.mubr.msk.bf16.mxu1 %vm207_vm0, %v1628_v34  ;;  %v2229_v34 = vld [vmem:[#allocation2] sm:$0xff] }
  0x4a   :  { %1561 = vmatmul.mubr.msk.bf16.gmra.mrb[4].mxu0 %vm207_vm0, %v1627_v35  ;;  %1569 = vmatmul.mubr.msk.bf16.gmra.mrb[4].mxu1 %vm207_vm0, %v1629_v36  ;;  %v2231_v35 = vld [vmem:[#allocation2 + $0x18] sm:$0xff] }
  0x85   :  { %v1971_v37 = vpop.permute.xlu1 %391 }
  0x86   :  { %vm440_vm3 = vcmp.eq.s32.totalorder %v1971_v37, %v2181_v13 }
  0x87   :  { %v2193_v18 = vsel %vm440_vm3, 1.0, %v2715_v60 }
  0x94   :  { %v1978_v39 = vpop.permute.xlu1 %394  ;;  %v389_v15 = vpop.permute.xlu0 %388 }
  0x95   :  { %vm439_vm2 = vcmp.eq.s32.totalorder %v389_v15, %v2181_v13  ;;  %vm441_vm4 = vcmp.eq.s32.totalorder %v1978_v39, %v2181_v13 }
  0x96   :  { %v1508_v17 = vsel %vm439_vm2, 1.0, %v2715_v60  ;;  %v2205_v22 = vsel %vm441_vm4, 1.0, %v2715_v60 }
  0x98   :  { %v1998_v52 = vpop.permute.xlu1 %397 }
  0x99   :  { %vm442_vm6 = vcmp.eq.s32.totalorder %v1998_v52, %v2181_v13 }
  0x9c   :  { %v2143_v4 = vpop.permute.xlu1 %400 }
  0x9d   :  { %vm443_vm7 = vcmp.eq.s32.totalorder %v2143_v4, %v2181_v13 }
  0xa0   :  { %v2161_v9 = vpop.permute.xlu1 %403 }
  0xa1   :  { %vm444_vm8 = vcmp.eq.s32.totalorder %v2161_v9, %v2181_v13 }
  0xa4   :  { %v2183_v14 = vpop.permute.xlu1 %406 }
  0xa5   :  { %vm445_vm9 = vcmp.eq.s32.totalorder %v2183_v14, %v2181_v13 }
  0xa8   :  { %v2187_v16 = vpop.permute.xlu1 %409 }
  0xa9   :  { %vm446_vm10 = vcmp.eq.s32.totalorder %v2187_v16, %v2181_v13 }
  0xac   :  { %v2198_v19 = vpop.permute.xlu1 %412 }
  0xad   :  { %vm447_vm11 = vcmp.eq.s32.totalorder %v2198_v19, %v2181_v13 }
  0xb0   :  { %v416_v24 = vpop.permute.xlu1 %415 }
  0xb1   :  { %vm448_vm5 = vcmp.eq.s32.totalorder %v416_v24, %v2181_v13 }
  0xb2   :  { %v2211_v25 = vsel %vm448_vm5, 1.0, %v2715_v60 }
  0xb4   :  { %v2215_v26 = vpop.permute.xlu1 %418 }
  0xb5   :  { %vm449_vm12 = vcmp.eq.s32.totalorder %v2215_v26, %v2181_v13 }
  0xb8   :  { %v2217_v27 = vpop.permute.xlu1 %424 }
  0xb9   :  { %vm451_vm13 = vcmp.eq.s32.totalorder %v2217_v27, %v2181_v13 }
 0x115   :  { %v1558_v40 = vpop.f32.mrb[0].mxu0  ;;  %v1566_v41 = vpop.f32.mrb[0].mxu1 }
 0x116   :  { %v1981_v42 = vmul.f32 %v1558_v40, %v1976_v38  ;;  %v1984_v43 = vmul.f32 %v1566_v41, %v1976_v38  ;;  %v290_v44 = vpop.f32.mrb[1].mxu0  ;;  %v322_v45 = vpop.f32.mrb[1].mxu1  ;;  %v2244_v40 = vld [vmem:[#allocation2 + $0x40] sm:$0xff]  ;;  %v2246_v41 = vld [vmem:[#allocation2 + $0x58] sm:$0xff] }
 0x117   :  { %v1559_v46 = vpop.f32.mrb[2].mxu0  ;;  %v1567_v47 = vpop.f32.mrb[2].mxu1  ;;  %v1993_v50 = vmul.f32 %v1976_v38, %v290_v44  ;;  %v2007_v55 = vmul.f32 %v1976_v38, %v322_v45 }
 0x118   :  { %507 = vmax.xlane.f32.xlu0 %v1984_v43  ;;  %491 = vmax.xlane.f32.xlu1 %v1981_v42  ;;  %v1988_v48 = vpop.f32.mrb[3].mxu0  ;;  %v1990_v49 = vpop.f32.mrb[3].mxu1  ;;  %v1996_v51 = vmul.f32 %v1559_v46, %v1976_v38  ;;  %v2010_v56 = vmul.f32 %v1567_v47, %v1976_v38  ;;  %v842_v23 = vmul.f32 %v2205_v22, %v1981_v42 }
 0x119   :  { %v2135_v2 = vmul.f32 %v1976_v38, %v1988_v48  ;;  %v2139_v3 = vmul.f32 %v1976_v38, %v1990_v49  ;;  %v840_v20 = vmul.f32 %v1508_v17, %v1993_v50  ;;  %v2259_v48 = vld [vmem:[#allocation2 + $0x48] sm:$0xff] }
 0x11a   :  { %2741 = vst [vmem:[#allocation10_spill] sm:$0xff] %v2259_v48  ;;  %v2261_v49 = vld [vmem:[#allocation2 + $0x8] sm:$0xff] }
 0x11b   :  { %v841_v14 = vmul.f32 %v2193_v18, %v2135_v2 }
 0x11c   :  { %487 = vmax.xlane.f32.xlu0 %v1993_v50  ;;  %493 = vmax.xlane.f32.xlu1 %v1996_v51 }
 0x11d   :  { %v2002_v53 = vpop.f32.mrb[4].mxu0  ;;  %v2004_v54 = vpop.f32.mrb[4].mxu1 }
 0x11e   :  { %v2012_v57 = vpop.f32.mrb[5].mxu0  ;;  %v2014_v58 = vpop.f32.mrb[5].mxu1  ;;  %v2147_v5 = vmul.f32 %v2002_v53, %v1976_v38  ;;  %v2154_v7 = vmul.f32 %v2004_v54, %v1976_v38 }
 0x11f   :  { %v1563_v61 = vpop.f32.mrb[6].mxu0  ;;  %v1571_v62 = vpop.f32.mrb[6].mxu1  ;;  %v2167_v10 = vmul.f32 %v1976_v38, %v2012_v57  ;;  %v2174_v12 = vmul.f32 %v1976_v38, %v2014_v58 }
 0x120   :  { %503 = vmax.xlane.f32.xlu0 %v2007_v55  ;;  %509 = vmax.xlane.f32.xlu1 %v2010_v56  ;;  %v309_v63 = vpop.f32.mrb[7].mxu0  ;;  %v341_v0 = vpop.f32.mrb[7].mxu1  ;;  %v2150_v6 = vmul.f32 %v1563_v61, %v1976_v38  ;;  %v2159_v8 = vmul.f32 %v1571_v62, %v1976_v38  ;;  %v2276_v61 = vld [vmem:[#allocation2 + $0x38] sm:$0xff] }
 0x121   :  { %v2131_v1 = vmul.f32 %v1976_v38, %v341_v0  ;;  %v2170_v11 = vmul.f32 %v1976_v38, %v309_v63  ;;  %2744 = vst [vmem:[#allocation13_spill] sm:$0xff] %v2276_v61 }
 0x124   :  { %505 = vmax.xlane.f32.xlu1 %v2139_v3  ;;  %489 = vmax.xlane.f32.xlu0 %v2135_v2 }
 0x128   :  { %499 = vmax.xlane.f32.xlu0 %v2147_v5  ;;  %501 = vmax.xlane.f32.xlu1 %v2150_v6 }
 0x12c   :  { %515 = vmax.xlane.f32.xlu0 %v2154_v7  ;;  %517 = vmax.xlane.f32.xlu1 %v2159_v8 }
 0x130   :  { %495 = vmax.xlane.f32.xlu0 %v2167_v10  ;;  %497 = vmax.xlane.f32.xlu1 %v2170_v11 }
 0x134   :  { %511 = vmax.xlane.f32.xlu0 %v2174_v12 }
 0x138   :  { %936 = vadd.xlane.f32.xlu0 %v1508_v17  ;;  %v2289_v17 = vld [vmem:[#allocation2 + $0x70] sm:$0xff] }
 0x139   :  { %2747 = vst [vmem:[#allocation16_spill] sm:$0xff] %v2289_v17 }
 0x13c   :  { %938 = vadd.xlane.f32.xlu0 %v2193_v18 }
 0x140   :  { %856 = vadd.xlane.f32.xlu0 %v840_v20  ;;  %v2291_v20 = vld [vmem:[#allocation2 + $0x78] sm:$0xff] }
 0x141   :  { %430 = vperm.xlu1 %1613, %v384_v21   ;;  %2748 = vst [vmem:[#allocation17_spill] sm:$0xff] %v2291_v20 }
 0x144   :  { %860 = vadd.xlane.f32.xlu0 %v842_v23 }
 0x148   :  { %954 = vadd.xlane.f32.xlu0 %v2211_v25 }
 0x165   :  { %513 = vmax.xlane.f32.xlu1 %v2131_v1 }
 0x1a5   :  { %v508_v30 = vpop.xlane.xlu0 %507  ;;  %v492_v31 = vpop.xlane.xlu1 %491 }
 0x1a6   :  { %v2224_v32 = vmax.f32 %v2219_v28, %v508_v30  ;;  %v2227_v33 = vmax.f32 %v2221_v29, %v492_v31  ;;  %v2305_v31 = vld [vmem:[#allocation2 + $0x20] sm:$0xff] }
 0x1a7   :  { %2751 = vst [vmem:[#allocation20_spill] sm:$0xff] %v2305_v31 }
 0x1a8   :  { %1010 = vst.msk [vmem:[#allocation2 + $0x50] sm:$0xff] %vm29_vm1, %v2224_v32  ;;  %1002 = vst.msk [vmem:[#allocation2 + $0x10] sm:$0xff] %vm29_vm1, %v2227_v33  ;;  %611 = vperm.xlu1 %1613, %v2227_v33  }
 0x1a9   :  { %v488_v36 = vpop.xlane.xlu0 %487  ;;  %v494_v37 = vpop.xlane.xlu1 %493 }
 0x1aa   :  { %v2239_v38 = vmax.f32 %v2229_v34, %v488_v36  ;;  %v2242_v39 = vmax.f32 %v2231_v35, %v494_v37  ;;  %v2307_v36 = vld [vmem:[#allocation2 + $0x28] sm:$0xff] }
 0x1ab   :  { %2752 = vst [vmem:[#allocation21_spill] sm:$0xff] %v2307_v36 }
 0x1ac   :  { %1000 = vst.msk [vmem:[#allocation2] sm:$0xff] %vm29_vm1, %v2239_v38  ;;  %1003 = vst.msk [vmem:[#allocation2 + $0x18] sm:$0xff] %vm29_vm1, %v2242_v39  ;;  %601 = vperm.xlu1 %1613, %v2239_v38   ;;  %v1016_v18 = vsel %vm29_vm1, %v2239_v38, -inf }
 0x1ad   :  { %v504_v44 = vpop.xlane.xlu0 %503  ;;  %v510_v45 = vpop.xlane.xlu1 %509 }
 0x1ae   :  { %v2254_v46 = vmax.f32 %v2244_v40, %v504_v44  ;;  %v2257_v47 = vmax.f32 %v2246_v41, %v510_v45 }
 0x1b0   :  { %1008 = vst.msk [vmem:[#allocation2 + $0x40] sm:$0xff] %vm29_vm1, %v2254_v46  ;;  %1011 = vst.msk [vmem:[#allocation2 + $0x58] sm:$0xff] %vm29_vm1, %v2257_v47  ;;  %616 = vperm.xlu1 %1613, %v2242_v39  }
 0x1b1   :  { %v506_v53 = vpop.xlane.xlu1 %505  ;;  %v490_v54 = vpop.xlane.xlu0 %489 }
 0x1b2   :  { %v2269_v57 = vmax.f32 %v2259_v48, %v506_v53  ;;  %v2272_v58 = vmax.f32 %v2261_v49, %v490_v54  ;;  %v2320_v54 = vld [vmem:[#allocation2 + $0x60] sm:$0xff] }
 0x1b4   :  { %2742 = vst [vmem:[#allocation11_spill] sm:$0xff] %v2269_v57  ;;  %1009 = vst.msk [vmem:[#allocation2 + $0x48] sm:$0xff] %vm29_vm1, %v2269_v57  ;;  %606 = vperm.xlu1 %1613, %v2272_v58   ;;  %v1017_v19 = vsel %vm29_vm1, %v2272_v58, -inf }
 0x1b5   :  { %1001 = vst.msk [vmem:[#allocation2 + $0x8] sm:$0xff] %vm29_vm1, %v2272_v58  ;;  %v500_v62 = vpop.xlane.xlu0 %499  ;;  %v502_v63 = vpop.xlane.xlu1 %501 }
 0x1b6   :  { %v2284_v0 = vmax.f32 %v2274_v59, %v500_v62  ;;  %v2287_v15 = vmax.f32 %v2276_v61, %v502_v63  ;;  %v929_v59 = vld [vmem:[#allocation5 + $0x48] sm:$0xff] }
 0x1b8   :  { %2745 = vst [vmem:[#allocation14_spill] sm:$0xff] %v2284_v0  ;;  %2746 = vst [vmem:[#allocation15_spill] sm:$0xff] %v2287_v15  ;;  %636 = vperm.xlu0 %1612, %v2287_v15   ;;  %631 = vperm.xlu1 %1613, %v2284_v0   ;;  %v1024_v16 = vsel %vm29_vm1, %v2284_v0, -inf }
 0x1b9   :  { %1006 = vst.msk [vmem:[#allocation2 + $0x30] sm:$0xff] %vm29_vm1, %v2284_v0  ;;  %1007 = vst.msk [vmem:[#allocation2 + $0x38] sm:$0xff] %vm29_vm1, %v2287_v15  ;;  %v516_v21 = vpop.xlane.xlu0 %515  ;;  %v518_v23 = vpop.xlane.xlu1 %517 }
 0x1ba   :  { %v2300_v24 = vmax.f32 %v2289_v17, %v516_v21  ;;  %v2303_v30 = vmax.f32 %v2291_v20, %v518_v23  ;;  %v920_v21 = vld [vmem:[#allocation5] sm:$0xff]  ;;  %v1030_v17 = vsel %vm29_vm1, %v2269_v57, -inf }
 0x1bc   :  { %2749 = vst [vmem:[#allocation18_spill] sm:$0xff] %v2300_v24  ;;  %2750 = vst [vmem:[#allocation19_spill] sm:$0xff] %v2303_v30  ;;  %641 = vperm.xlu0 %1612, %v2254_v46  }
 0x1bd   :  { %1014 = vst.msk [vmem:[#allocation2 + $0x70] sm:$0xff] %vm29_vm1, %v2300_v24  ;;  %1015 = vst.msk [vmem:[#allocation2 + $0x78] sm:$0xff] %vm29_vm1, %v2303_v30  ;;  %v496_v37 = vpop.xlane.xlu0 %495  ;;  %v498_v44 = vpop.xlane.xlu1 %497 }
 0x1be   :  { %v2315_v45 = vmax.f32 %v2305_v31, %v496_v37  ;;  %v2318_v53 = vmax.f32 %v2307_v36, %v498_v44  ;;  %v921_v44 = vld [vmem:[#allocation5 + $0x8] sm:$0xff]  ;;  %v824_v36 = vld [vmem:[#allocation4] sm:$0xff]  ;;  %v826_v31 = vld [vmem:[#allocation4 + $0x10] sm:$0xff] }
 0x1c0   :  { %2753 = vst [vmem:[#allocation22_spill] sm:$0xff] %v2315_v45  ;;  %2754 = vst [vmem:[#allocation23_spill] sm:$0xff] %v2318_v53  ;;  %646 = vperm.xlu0 %1612, %v2269_v57   ;;  %621 = vperm.xlu1 %1613, %v2315_v45  }
 0x1c1   :  { %1004 = vst.msk [vmem:[#allocation2 + $0x20] sm:$0xff] %vm29_vm1, %v2315_v45  ;;  %1005 = vst.msk [vmem:[#allocation2 + $0x28] sm:$0xff] %vm29_vm1, %v2318_v53  ;;  %v512_v62 = vpop.xlane.xlu0 %511 }
 0x1c2   :  { %v2329_v63 = vmax.f32 %v2320_v54, %v512_v62 }
 0x1c4   :  { %1012 = vst.msk [vmem:[#allocation2 + $0x60] sm:$0xff] %vm29_vm1, %v2329_v63  ;;  %651 = vperm.xlu0 %1612, %v2224_v32   ;;  %626 = vperm.xlu1 %1613, %v2318_v53  }
 0x1c5   :  { %v937_v23 = vpop.xlane.xlu0 %936 }
 0x1c6   :  { %v968_v37 = vadd.f32 %v937_v23, %v920_v21 }
 0x1c8   :  { %984 = vst.msk [vmem:[#allocation5] sm:$0xff] %vm29_vm1, %v968_v37  ;;  %656 = vperm.xlu0 %1612, %v2257_v47  }
 0x1c9   :  { %v939_v60 = vpop.xlane.xlu0 %938 }
 0x1ca   :  { %v969_v20 = vadd.f32 %v939_v60, %v921_v44  ;;  %v381_v60 = vld [vmem:[%s2709_s1 + $0x58] sm:$0xff]  ;;  %v2359_v44 = vpop.permute.xlu1 %430 }
 0x1cb   :  { %vm453_vm15 = vcmp.eq.s32.totalorder %v2359_v44, %v2181_v13 }
 0x1cc   :  { %985 = vst.msk [vmem:[#allocation5 + $0x8] sm:$0xff] %vm29_vm1, %v969_v20  ;;  %661 = vperm.xlu0 %1612, %v2329_v63  }
 0x1cd   :  { %v857_v62 = vpop.xlane.xlu0 %856 }
 0x1ce   :  { %v888_v61 = vadd.f32 %v857_v62, %v824_v36  ;;  %v2755_v36 = vmov 0.0  }
 0x1cf   :  { %v1512_v62 = vsel %vm443_vm7, 1.0, %v2755_v36  ;;  %v1513_v52 = vsel %vm444_vm8, 1.0, %v2755_v36  ;;  %v2376_v4 = vsel %vm445_vm9, 1.0, %v2755_v36  ;;  %v2382_v9 = vsel %vm446_vm10, 1.0, %v2755_v36 }
 0x1d0   :  { %904 = vst.msk [vmem:[#allocation4] sm:$0xff] %vm29_vm1, %v888_v61  ;;  %671 = vperm.xlu0 %1612, %v2300_v24   ;;  %v383_v61 = vld [vmem:[%s2709_s1 + $0x68] sm:$0xff]  ;;  %v2429_v57 = vsel %vm449_vm12, 1.0, %v2755_v36 }
 0x1d1   :  { %v861_v21 = vpop.xlane.xlu0 %860 }
 0x1d2   :  { %v890_v23 = vadd.f32 %v861_v21, %v826_v31  ;;  %v385_v31 = vld [vmem:[%s2709_s1 + $0x78] sm:$0xff]  ;;  %v2362_v21 = vld [vmem:[#allocation2 + $0x68] sm:$0xff] }
 0x1d3   :  { %2756 = vst [vmem:[#allocation24_spill] sm:$0xff] %v2362_v21 }
 0x1d4   :  { %906 = vst.msk [vmem:[#allocation4 + $0x10] sm:$0xff] %vm29_vm1, %v890_v23  ;;  %676 = vperm.xlu0 %1612, %v2303_v30  }
 0x1d5   :  { %v955_v20 = vpop.xlane.xlu0 %954 }
 0x1d6   :  { %v977_v37 = vadd.f32 %v955_v20, %v929_v59  ;;  %v1511_v59 = vsel %vm442_vm6, 1.0, %v2755_v36  ;;  %v1022_v20 = vsel %vm29_vm1, %v2318_v53, -inf  ;;  %v1032_v53 = vsel %vm29_vm1, %v2224_v32, -inf }
 0x1d7   :  { %v843_v48 = vmul.f32 %v1511_v59, %v1996_v51 }
 0x1d8   :  { %421 = vperm.xlu0 %1612, %v381_v60   ;;  %993 = vst.msk [vmem:[#allocation5 + $0x48] sm:$0xff] %vm29_vm1, %v977_v37  ;;  %v1020_v60 = vsel %vm29_vm1, %v2315_v45, -inf  ;;  %v1026_v37 = vsel %vm29_vm1, %v2287_v15, -inf  ;;  %v1028_v45 = vsel %vm29_vm1, %v2254_v46, -inf }
 0x1dc   :  { %427 = vperm.xlu0 %1612, %v383_v61   ;;  %v2398_v61 = vsel %vm447_vm11, 1.0, %v2755_v36 }
 0x1e0   :  { %433 = vperm.xlu0 %1612, %v385_v31   ;;  %v1018_v31 = vsel %vm29_vm1, %v2227_v33, -inf }
 0x1e1   :  { %v1025_v15 = vmax.f32 %v1018_v31, %v1024_v16  ;;  %v1042_v31 = vsel %vm29_vm1, %v2303_v30, -inf }
 0x1e8   :  { %940 = vadd.xlane.f32.xlu1 %v2205_v22 }
 0x1ec   :  { %942 = vadd.xlane.f32.xlu1 %v1511_v59 }
 0x1f0   :  { %944 = vadd.xlane.f32.xlu1 %v1512_v62 }
 0x1f2   :  { %v514_v22 = vpop.xlane.xlu1 %513 }
 0x1f3   :  { %v2367_v23 = vmax.f32 %v2362_v21, %v514_v22  ;;  %v1019_v22 = vsel %vm29_vm1, %v2242_v39, -inf  ;;  %v1023_v21 = vmax.f32 %v1017_v19, %v1022_v20  ;;  %v1040_v19 = vsel %vm29_vm1, %v2300_v24, -inf }
 0x1f4   :  { %946 = vadd.xlane.f32.xlu1 %v1513_v52  ;;  %v1027_v0 = vmax.f32 %v1019_v22, %v1026_v37  ;;  %v1033_v37 = vmax.f32 %v1025_v15, %v1032_v53 }
 0x1f5   :  { %2757 = vst [vmem:[#allocation25_spill] sm:$0xff] %v2367_v23  ;;  %1013 = vst.msk [vmem:[#allocation2 + $0x68] sm:$0xff] %vm29_vm1, %v2367_v23  ;;  %666 = vperm.xlu0 %1612, %v2367_v23   ;;  %v1038_v20 = vsel %vm29_vm1, %v2367_v23, -inf  ;;  %v1031_v16 = vmax.f32 %v1023_v21, %v1030_v17  ;;  %v844_v21 = vmul.f32 %v1512_v62, %v2167_v10 }
 0x1f7   :  { %v1039_v22 = vmax.f32 %v1031_v16, %v1038_v20 }
 0x1f8   :  { %948 = vadd.xlane.f32.xlu1 %v2376_v4 }
 0x1fc   :  { %950 = vadd.xlane.f32.xlu1 %v2382_v9 }
 0x200   :  { %858 = vadd.xlane.f32.xlu1 %v841_v14  ;;  %v1021_v14 = vmax.f32 %v1016_v18, %v1020_v60  ;;  %v1034_v60 = vsel %vm29_vm1, %v2257_v47, -inf  ;;  %v1036_v18 = vsel %vm29_vm1, %v2329_v63, -inf }
 0x201   :  { %v1035_v26 = vmax.f32 %v1027_v0, %v1034_v60  ;;  %v845_v0 = vmul.f32 %v1513_v52, %v2170_v11 }
 0x202   :  { %v1029_v59 = vmax.f32 %v1021_v14, %v1028_v45  ;;  %v1041_v45 = vmax.f32 %v1033_v37, %v1040_v19 }
 0x203   :  { %v1043_v17 = vmax.f32 %v1035_v26, %v1042_v31 }
 0x204   :  { %952 = vadd.xlane.f32.xlu1 %v2398_v61 }
 0x205   :  { %v1045_v53 = vmax.f32 %v1041_v45, %v1043_v17 }
 0x208   :  { %862 = vadd.xlane.f32.xlu1 %v843_v48  ;;  %v1037_v48 = vmax.f32 %v1029_v59, %v1036_v18 }
 0x20a   :  { %v1044_v15 = vmax.f32 %v1037_v48, %v1039_v22 }
 0x20c   :  { %956 = vadd.xlane.f32.xlu1 %v2429_v57  ;;  %v1046_v14 = vmax.f32 %v1044_v15, %v1045_v53 }
 0x210   :  { %866 = vadd.xlane.f32.xlu1 %v845_v0 }
 0x214   :  { %864 = vadd.xlane.f32.xlu0 %v844_v21  ;;  %1047 = vmax.xlane.f32.xlu1 %v1046_v14 }
 0x227   :  { %v612_v20 = vpop.permute.xlu1 %611 }
 0x228   :  { %v681_v62 = vsub.f32 %v1981_v42, %v612_v20 }
 0x22a   :  { %v699_v22 = vmul.f32 1.442695, %v681_v62 }
 0x22b   :  { %v602_v23 = vpop.permute.xlu1 %601 }
 0x22c   :  { %v679_v59 = vsub.f32 %v1993_v50, %v602_v23 }
 0x22e   :  { %v695_v18 = vmul.f32 1.442695, %v679_v59 }
 0x22f   :  { %v617_v45 = vpop.permute.xlu1 %616 }
 0x230   :  { %v682_v50 = vsub.f32 %v1996_v51, %v617_v45 }
 0x232   :  { %v701_v53 = vmul.f32 1.442695, %v682_v50 }
 0x233   :  { %v607_v20 = vpop.permute.xlu1 %606 }
 0x234   :  { %v680_v59 = vsub.f32 %v2135_v2, %v607_v20  ;;  %v846_v2 = vmul.f32 %v2376_v4, %v2147_v5 }
 0x237   :  { %v2434_v60 = vpop.permute.xlu0 %636 }
 0x23b   :  { %v642_v16 = vpop.permute.xlu0 %641 }
 0x23c   :  { %v687_v31 = vsub.f32 %v2007_v55, %v642_v16  ;;  %v2459_v16 = vsel %vm451_vm13, 1.0, %v2755_v36 }
 0x23e   :  { %v711_v17 = vmul.f32 1.442695, %v687_v31 }
 0x23f   :  { %v647_v30 = vpop.permute.xlu0 %646 }
 0x240   :  { %v688_v62 = vsub.f32 %v2139_v3, %v647_v30 }
 0x242   :  { %v713_v45 = vmul.f32 1.442695, %v688_v62 }
 0x243   :  { %v652_v24 = vpop.permute.xlu0 %651 }
 0x244   :  { %v689_v37 = vsub.f32 %v1984_v43, %v652_v24 }
 0x246   :  { %v715_v52 = vmul.f32 1.442695, %v689_v37 }
 0x247   :  { %v657_v26 = vpop.permute.xlu0 %656 }
 0x248   :  { %1630 = vpow2.f32 %v715_v52  ;;  %v690_v21 = vsub.f32 %v2010_v56, %v657_v26 }
 0x249   :  { %1632 = vpow2.f32 %v695_v18  ;;  %v697_v18 = vmul.f32 1.442695, %v680_v59 }
 0x24a   :  { %1634 = vpow2.f32 %v699_v22  ;;  %v717_v37 = vmul.f32 1.442695, %v690_v21 }
 0x24b   :  { %v662_v19 = vpop.permute.xlu0 %661  ;;  %1636 = vpow2.f32 %v711_v17 }
 0x24c   :  { %v691_v0 = vsub.f32 %v2174_v12, %v662_v19  ;;  %v632_v19 = vpop.permute.xlu1 %631 }
 0x24e   :  { %v719_v42 = vmul.f32 1.442695, %v691_v0  ;;  %v847_v0 = vmul.f32 %v2382_v9, %v2150_v6 }
 0x24f   :  { %v672_v48 = vpop.permute.xlu0 %671 }
 0x250   :  { %1638 = vpow2.f32 %v719_v42  ;;  %v693_v27 = vsub.f32 %v2154_v7, %v672_v48  ;;  %v685_v48 = vsub.f32 %v2147_v5, %v632_v19  ;;  %v622_v17 = vpop.permute.xlu1 %621  ;;  %v1522_v42 = vsel %vm453_vm15, 1.0, %v2755_v36 }
 0x251   :  { %1640 = vpow2.f32 %v701_v53  ;;  %v683_v50 = vsub.f32 %v2167_v10, %v622_v17  ;;  %v686_v53 = vsub.f32 %v2150_v6, %v2434_v60  ;;  %v849_v6 = vmul.f32 %v2211_v25, %v2139_v3 }
 0x252   :  { %v2441_v15 = vpop.eup %1630  ;;  %1642 = vpow2.f32 %v717_v37  ;;  %v723_v31 = vmul.f32 1.442695, %v693_v27  ;;  %v707_v4 = vmul.f32 1.442695, %v685_v48  ;;  %v922_v27 = vld [vmem:[#allocation5 + $0x10] sm:$0xff] }
 0x253   :  { %v2444_v24 = vpop.permute.xlu0 %676  ;;  %779 = vadd.xlane.f32.xlu1 %v2441_v15  ;;  %v2447_v23 = vpop.eup %1632  ;;  %1644 = vpow2.f32 %v697_v18  ;;  %v703_v9 = vmul.f32 1.442695, %v683_v50  ;;  %v709_v10 = vmul.f32 1.442695, %v686_v53 }
 0x254   :  { %v2464_v52 = vpop.eup %1634  ;;  %1646 = vpow2.f32 %v723_v31  ;;  %v627_v21 = vpop.permute.xlu1 %626  ;;  %v923_v31 = vld [vmem:[#allocation5 + $0x18] sm:$0xff] }
 0x255   :  { %v2466_v26 = vpop.eup %1636  ;;  %1648 = vpow2.f32 %v713_v45  ;;  %v684_v20 = vsub.f32 %v2170_v11, %v627_v21  ;;  %v850_v11 = vmul.f32 %v2429_v57, %v1984_v43  ;;  %v924_v43 = vld [vmem:[#allocation5 + $0x20] sm:$0xff] }
 0x256   :  { %1650 = vpow2.f32 %v707_v4 }
 0x257   :  { %v422_v14 = vpop.permute.xlu0 %421  ;;  %759 = vadd.xlane.f32.xlu1 %v2447_v23  ;;  %1652 = vpow2.f32 %v703_v9  ;;  %v705_v37 = vmul.f32 1.442695, %v684_v20 }
 0x258   :  { %vm450_vm14 = vcmp.eq.s32.totalorder %v422_v14, %v2181_v13  ;;  %1654 = vpow2.f32 %v709_v10  ;;  %v926_v10 = vld [vmem:[#allocation5 + $0x30] sm:$0xff] }
 0x259   :  { %v2455_v51 = vsel %vm450_vm14, 1.0, %v2755_v36  ;;  %1656 = vpow2.f32 %v705_v37 }
 0x25a   :  { %958 = vadd.xlane.f32.xlu0 %v2455_v51  ;;  %v2473_v22 = vpop.eup %1638 }
 0x25b   :  { %960 = vadd.xlane.f32.xlu1 %v2459_v16  ;;  %v2477_v30 = vpop.eup %1640  ;;  %v428_v60 = vpop.permute.xlu0 %427 }
 0x25c   :  { %v2485_v5 = vpop.eup %1642  ;;  %vm452_vm0 = vcmp.eq.s32.totalorder %v428_v60, %v2181_v13  ;;  %v848_v60 = vmul.f32 %v2398_v61, %v2007_v55 }
 0x25d   :  { %v2491_v14 = vpop.eup %1644 }
 0x25e   :  { %763 = vadd.xlane.f32.xlu0 %v2464_v52  ;;  %v2493_v44 = vpop.eup %1646 }
 0x25f   :  { %775 = vadd.xlane.f32.xlu1 %v2466_v26  ;;  %v2498_v59 = vpop.eup %1648  ;;  %v434_v3 = vpop.permute.xlu0 %433 }
 0x260   :  { %v2503_v18 = vpop.eup %1650  ;;  %vm454_vm2 = vcmp.eq.s32.totalorder %v434_v3, %v2181_v13  ;;  %v827_v13 = vld [vmem:[#allocation4 + $0x18] sm:$0xff] }
 0x261   :  { %v2509_v25 = vpop.eup %1652 }
 0x262   :  { %868 = vadd.xlane.f32.xlu0 %v846_v2  ;;  %v852_v2 = vmul.f32 %v2459_v16, %v2174_v12  ;;  %v2515_v17 = vpop.eup %1654  ;;  %v925_v12 = vld [vmem:[#allocation5 + $0x28] sm:$0xff] }
 0x263   :  { %783 = vadd.xlane.f32.xlu1 %v2473_v22  ;;  %v2521_v16 = vpop.eup %1656 }
 0x266   :  { %765 = vadd.xlane.f32.xlu0 %v2477_v30 }
 0x267   :  { %870 = vadd.xlane.f32.xlu1 %v847_v0  ;;  %v854_v0 = vmul.f32 %v1522_v42, %v2154_v7  ;;  %v694_v7 = vsub.f32 %v2159_v8, %v2444_v24 }
 0x26a   :  { %781 = vadd.xlane.f32.xlu0 %v2485_v5 }
 0x26b   :  { %964 = vadd.xlane.f32.xlu1 %v1522_v42 }
 0x26e   :  { %761 = vadd.xlane.f32.xlu0 %v2491_v14 }
 0x26f   :  { %787 = vadd.xlane.f32.xlu1 %v2493_v44 }
 0x272   :  { %777 = vadd.xlane.f32.xlu0 %v2498_v59 }
 0x273   :  { %874 = vadd.xlane.f32.xlu1 %v849_v6  ;;  %v1521_v6 = vsel %vm452_vm0, 1.0, %v2755_v36 }
 0x274   :  { %v667_v57 = vpop.permute.xlu0 %666 }
 0x275   :  { %v941_v62 = vpop.xlane.xlu1 %940  ;;  %v692_v53 = vsub.f32 %v2131_v1, %v667_v57 }
 0x276   :  { %v970_v19 = vadd.f32 %v941_v62, %v922_v27  ;;  %771 = vadd.xlane.f32.xlu0 %v2503_v18  ;;  %v725_v27 = vmul.f32 1.442695, %v694_v7  ;;  %v927_v62 = vld [vmem:[#allocation5 + $0x38] sm:$0xff] }
 0x277   :  { %876 = vadd.xlane.f32.xlu1 %v850_v11  ;;  %v721_v42 = vmul.f32 1.442695, %v692_v53 }
 0x278   :  { %986 = vst.msk [vmem:[#allocation5 + $0x10] sm:$0xff] %vm29_vm1, %v970_v19  ;;  %v825_v19 = vld [vmem:[#allocation4 + $0x8] sm:$0xff] }
 0x279   :  { %v943_v48 = vpop.xlane.xlu1 %942  ;;  %1658 = vpow2.f32 %v721_v42  ;;  %v828_v42 = vld [vmem:[#allocation4 + $0x20] sm:$0xff] }
 0x27a   :  { %v971_v45 = vadd.f32 %v943_v48, %v923_v31  ;;  %767 = vadd.xlane.f32.xlu0 %v2509_v25  ;;  %1660 = vpow2.f32 %v725_v27 }
 0x27b   :  { %880 = vadd.xlane.f32.xlu1 %v852_v2  ;;  %v1523_v2 = vsel %vm454_vm2, 1.0, %v2755_v36  ;;  %v930_v36 = vld [vmem:[#allocation5 + $0x50] sm:$0xff] }
 0x27c   :  { %987 = vst.msk [vmem:[#allocation5 + $0x18] sm:$0xff] %vm29_vm1, %v971_v45  ;;  %v928_v45 = vld [vmem:[#allocation5 + $0x40] sm:$0xff] }
 0x27d   :  { %v945_v4 = vpop.xlane.xlu1 %944 }
 0x27e   :  { %v972_v50 = vadd.f32 %v945_v4, %v924_v43  ;;  %773 = vadd.xlane.f32.xlu0 %v2515_v17  ;;  %v851_v4 = vmul.f32 %v2455_v51, %v2010_v56 }
 0x27f   :  { %884 = vadd.xlane.f32.xlu1 %v854_v0 }
 0x280   :  { %988 = vst.msk [vmem:[#allocation5 + $0x20] sm:$0xff] %vm29_vm1, %v972_v50 }
 0x281   :  { %v947_v9 = vpop.xlane.xlu1 %946 }
 0x282   :  { %v973_v21 = vadd.f32 %v947_v9, %v925_v12  ;;  %769 = vadd.xlane.f32.xlu0 %v2521_v16  ;;  %v829_v12 = vld [vmem:[#allocation4 + $0x28] sm:$0xff]  ;;  %v853_v9 = vmul.f32 %v1521_v6, %v2131_v1 }
 0x283   :  { %v2536_v43 = vpop.eup %1658 }
 0x284   :  { %989 = vst.msk [vmem:[#allocation5 + $0x28] sm:$0xff] %vm29_vm1, %v973_v21  ;;  %v2540_v3 = vpop.eup %1660 }
 0x285   :  { %v949_v20 = vpop.xlane.xlu1 %948 }
 0x286   :  { %v974_v37 = vadd.f32 %v949_v20, %v926_v10  ;;  %962 = vadd.xlane.f32.xlu0 %v1521_v6  ;;  %v855_v10 = vmul.f32 %v1523_v2, %v2159_v8  ;;  %v561_v6 = vsub.f32 %v2219_v28, %v2224_v32  ;;  %v551_v8 = vsub.f32 %v2229_v34, %v2239_v38 }
 0x287   :  { %v554_v28 = vsub.f32 %v2231_v35, %v2242_v39 }
 0x288   :  { %990 = vst.msk [vmem:[#allocation5 + $0x30] sm:$0xff] %vm29_vm1, %v974_v37 }
 0x289   :  { %v951_v11 = vpop.xlane.xlu1 %950 }
 0x28a   :  { %v975_v24 = vadd.f32 %v951_v11, %v927_v62  ;;  %872 = vadd.xlane.f32.xlu0 %v848_v60 }
 0x28c   :  { %991 = vst.msk [vmem:[#allocation5 + $0x38] sm:$0xff] %vm29_vm1, %v975_v24  ;;  %v587_v24 = vmul.f32 1.442695, %v561_v6 }
 0x28d   :  { %v859_v31 = vpop.xlane.xlu1 %858 }
 0x28e   :  { %v889_v48 = vadd.f32 %v859_v31, %v825_v19  ;;  %966 = vadd.xlane.f32.xlu0 %v1523_v2  ;;  %1662 = vpow2.f32 %v587_v24  ;;  %v567_v19 = vmul.f32 1.442695, %v551_v8  ;;  %v553_v31 = vsub.f32 %v2221_v29, %v2227_v33  ;;  %v729_v8 = vld [vmem:[#allocation3 + $0x10] sm:$0xff] }
 0x28f   :  { %v559_v2 = vsub.f32 %v2244_v40, %v2254_v46  ;;  %v562_v40 = vsub.f32 %v2246_v41, %v2257_v47  ;;  %v552_v41 = vsub.f32 %v2261_v49, %v2272_v58 }
 0x290   :  { %905 = vst.msk [vmem:[#allocation4 + $0x8] sm:$0xff] %vm29_vm1, %v889_v48  ;;  %1664 = vpow2.f32 %v567_v19  ;;  %v571_v48 = vmul.f32 1.442695, %v553_v31  ;;  %v2762_v31 = vld [vmem:[#allocation11_spill] sm:$0xff] }
 0x291   :  { %v953_v55 = vpop.xlane.xlu1 %952  ;;  %v569_v6 = vmul.f32 1.442695, %v552_v41 }
 0x292   :  { %v976_v61 = vadd.f32 %v953_v55, %v928_v45  ;;  %785 = vadd.xlane.f32.xlu0 %v2536_v43  ;;  %v583_v45 = vmul.f32 1.442695, %v559_v2  ;;  %v563_v55 = vsub.f32 %v2320_v54, %v2329_v63  ;;  %1666 = vpow2.f32 %v571_v48  ;;  %v2763_v2 = vld [vmem:[#allocation10_spill] sm:$0xff] }
 0x293   :  { %v560_v48 = vsub.f32 %v2763_v2, %v2762_v31 }
 0x294   :  { %992 = vst.msk [vmem:[#allocation5 + $0x40] sm:$0xff] %vm29_vm1, %v976_v61  ;;  %1668 = vpow2.f32 %v583_v45  ;;  %v591_v34 = vmul.f32 1.442695, %v563_v55 }
 0x295   :  { %v863_v57 = vpop.xlane.xlu1 %862 }
 0x296   :  { %v891_v0 = vadd.f32 %v863_v57, %v827_v13  ;;  %789 = vadd.xlane.f32.xlu0 %v2540_v3  ;;  %v737_v13 = vld [vmem:[#allocation3 + $0x50] sm:$0xff]  ;;  %1670 = vpow2.f32 %v591_v34 }
 0x298   :  { %907 = vst.msk [vmem:[#allocation4 + $0x18] sm:$0xff] %vm29_vm1, %v891_v0  ;;  %v1663_v61 = vpop.eup %1662  ;;  %v573_v0 = vmul.f32 1.442695, %v554_v28  ;;  %v735_v28 = vld [vmem:[#allocation3 + $0x40] sm:$0xff] }
 0x299   :  { %v957_v50 = vpop.xlane.xlu1 %956  ;;  %v753_v57 = vmul.f32 %v1663_v61, %v737_v13 }
 0x29a   :  { %v978_v53 = vadd.f32 %v957_v50, %v930_v36  ;;  %878 = vadd.xlane.f32.xlu0 %v851_v4  ;;  %v1665_v29 = vpop.eup %1664  ;;  %v727_v50 = vld [vmem:[#allocation3] sm:$0xff]  ;;  %1672 = vpow2.f32 %v573_v0 }
 0x29c   :  { %994 = vst.msk [vmem:[#allocation5 + $0x50] sm:$0xff] %vm29_vm1, %v978_v53 }
 0x29d   :  { %v867_v21 = vpop.xlane.xlu1 %866 }
 0x29e   :  { %v893_v7 = vadd.f32 %v867_v21, %v829_v12  ;;  %882 = vadd.xlane.f32.xlu0 %v853_v9  ;;  %v743_v21 = vmul.f32 %v1665_v29, %v727_v50 }
 0x2a0   :  { %909 = vst.msk [vmem:[#allocation4 + $0x28] sm:$0xff] %vm29_vm1, %v893_v7 }
 0x2a1   :  { %v865_v20 = vpop.xlane.xlu0 %864  ;;  %v1048_v37 = vpop.xlane.xlu1 %1047 }
 0x2a2   :  { %v892_v27 = vadd.f32 %v865_v20, %v828_v42  ;;  %v1049_v56 = vrot.slane %v1048_v37, 4  ;;  %886 = vadd.xlane.f32.xlu0 %v855_v10  ;;  %v589_v10 = vmul.f32 1.442695, %v562_v40  ;;  %v2758_v20 = vld [vmem:[#allocation18_spill] sm:$0xff] }
 0x2a4   :  { %908 = vst.msk [vmem:[#allocation4 + $0x20] sm:$0xff] %vm29_vm1, %v892_v27  ;;  %v1050_v51 = vmax.f32 %v1048_v37, %v1049_v56  ;;  %v2759_v37 = vld [vmem:[#allocation16_spill] sm:$0xff] }
 0x2a6   :  { %v1051_v62 = vrot.slane %v1050_v51, 2 }
 0x2a8   :  { %v1052_v60 = vmax.f32 %v1050_v51, %v1051_v62 }
 0x2aa   :  { %v1053_v11 = vrot.slane %v1052_v60, 1 }
 0x2ac   :  { %v1054_v1 = vmax.f32 %v1052_v60, %v1053_v11  ;;  %v932_v60 = vld [vmem:[#allocation5 + $0x60] sm:$0xff] }
 0x2ae   :  { %1604 = vpush %v1054_v1  ;;  %v1667_v1 = vpop.eup %1666 }
 0x2af   :  { %v1669_v19 = vpop.eup %1668  ;;  %v745_v0 = vmul.f32 %v1667_v1, %v729_v8 }
 0x2df   :  { %s1605_s1 = spop %1604 }
 0x2e0   :  { %v2565_v36 = vstv %s1605_s1  ;;  %v780_v4 = vpop.xlane.xlu1 %779 }
 0x2e1   :  { %v801_v54 = vadd.f32 %v780_v4, %v753_v57  ;;  %v1058_v53 = vsub.f32 %v2272_v58, %v2565_v36  ;;  %v1057_v35 = vsub.f32 %v2239_v38, %v2565_v36  ;;  %v1059_v12 = vsub.f32 %v2227_v33, %v2565_v36  ;;  %v931_v33 = vld [vmem:[#allocation5 + $0x58] sm:$0xff]  ;;  %v2761_v58 = vld [vmem:[#allocation23_spill] sm:$0xff]  ;;  %v2764_v57 = vld [vmem:[#allocation14_spill] sm:$0xff] }
 0x2e2   :  { %v1060_v9 = vsub.f32 %v2242_v39, %v2565_v36  ;;  %v565_v38 = vsub.f32 %v2759_v37, %v2758_v20  ;;  %v2760_v39 = vld [vmem:[#allocation22_spill] sm:$0xff]  ;;  %v1062_v11 = vsub.f32 %v2761_v58, %v2565_v36  ;;  %v1063_v29 = vsub.f32 %v2764_v57, %v2565_v36  ;;  %v2765_v4 = vld [vmem:[#allocation15_spill] sm:$0xff] }
 0x2e3   :  { %818 = vst.msk [vmem:[#allocation3 + $0x50] sm:$0xff] %vm29_vm1, %v801_v54  ;;  %v1075_v7 = vmul.f32 1.442695, %v1058_v53  ;;  %v1073_v42 = vmul.f32 1.442695, %v1057_v35  ;;  %v1061_v62 = vsub.f32 %v2760_v39, %v2565_v36  ;;  %v1064_v50 = vsub.f32 %v2765_v4, %v2565_v36  ;;  %v1671_v35 = vpop.eup %1670  ;;  %v830_v37 = vld [vmem:[#allocation4 + $0x30] sm:$0xff] }
 0x2e4   :  { %v760_v27 = vpop.xlane.xlu1 %759  ;;  %v1077_v51 = vmul.f32 1.442695, %v1059_v12  ;;  %v1079_v49 = vmul.f32 1.442695, %v1060_v9  ;;  %v595_v45 = vmul.f32 1.442695, %v565_v38  ;;  %v751_v53 = vmul.f32 %v1669_v19, %v735_v28 }
 0x2e5   :  { %v791_v56 = vadd.f32 %v760_v27, %v743_v21  ;;  %1674 = vpow2.f32 %v1075_v7  ;;  %v1081_v34 = vmul.f32 1.442695, %v1061_v62  ;;  %v1083_v40 = vmul.f32 1.442695, %v1062_v11  ;;  %v2766_v9 = vld [vmem:[#allocation12_spill] sm:$0xff] }
 0x2e6   :  { %1676 = vpow2.f32 %v1073_v42  ;;  %v585_v12 = vmul.f32 1.442695, %v560_v48  ;;  %v557_v41 = vsub.f32 %v2766_v9, %v2764_v57  ;;  %v739_v42 = vld [vmem:[#allocation3 + $0x60] sm:$0xff]  ;;  %v1085_v38 = vmul.f32 1.442695, %v1063_v29  ;;  %v730_v11 = vld [vmem:[#allocation3 + $0x18] sm:$0xff] }
 0x2e7   :  { %808 = vst.msk [vmem:[#allocation3] sm:$0xff] %vm29_vm1, %v791_v56  ;;  %v959_v24 = vpop.xlane.xlu0 %958  ;;  %1678 = vpow2.f32 %v589_v10  ;;  %v1065_v27 = vsub.f32 %v2254_v46, %v2565_v36  ;;  %v1673_v56 = vpop.eup %1672  ;;  %v738_v57 = vld [vmem:[#allocation3 + $0x58] sm:$0xff] }
 0x2e8   :  { %v979_v55 = vadd.f32 %v959_v24, %v931_v33  ;;  %v961_v61 = vpop.xlane.xlu1 %960  ;;  %1680 = vpow2.f32 %v1077_v51  ;;  %v1087_v33 = vmul.f32 1.442695, %v1064_v50  ;;  %v1066_v51 = vsub.f32 %v2762_v31, %v2565_v36  ;;  %v2767_v24 = vld [vmem:[#allocation20_spill] sm:$0xff] }
 0x2e9   :  { %v980_v13 = vadd.f32 %v961_v61, %v932_v60  ;;  %1682 = vpow2.f32 %v1079_v49  ;;  %v755_v49 = vmul.f32 %v1671_v35, %v739_v42  ;;  %v555_v46 = vsub.f32 %v2767_v24, %v2760_v39  ;;  %v831_v61 = vld [vmem:[#allocation4 + $0x38] sm:$0xff] }
 0x2ea   :  { %995 = vst.msk [vmem:[#allocation5 + $0x58] sm:$0xff] %vm29_vm1, %v979_v55  ;;  %1684 = vpow2.f32 %v569_v6  ;;  %v579_v6 = vmul.f32 1.442695, %v557_v41  ;;  %v1089_v48 = vmul.f32 1.442695, %v1065_v27  ;;  %v1067_v31 = vsub.f32 %v2224_v32, %v2565_v36 }
 0x2eb   :  { %996 = vst.msk [vmem:[#allocation5 + $0x60] sm:$0xff] %vm29_vm1, %v980_v13  ;;  %v764_v54 = vpop.xlane.xlu0 %763  ;;  %1686 = vpow2.f32 %v595_v45  ;;  %v746_v55 = vmul.f32 %v1673_v56, %v730_v11  ;;  %v1091_v28 = vmul.f32 1.442695, %v1066_v51  ;;  %v1068_v39 = vsub.f32 %v2257_v47, %v2565_v36  ;;  %v741_v51 = vld [vmem:[#allocation3 + $0x70] sm:$0xff] }
 0x2ec   :  { %v793_v21 = vadd.f32 %v764_v54, %v745_v0  ;;  %v776_v7 = vpop.xlane.xlu1 %775  ;;  %1688 = vpow2.f32 %v1081_v34  ;;  %v2768_v0 = vld [vmem:[#allocation13_spill] sm:$0xff]  ;;  %v1069_v47 = vsub.f32 %v2329_v63, %v2565_v36 }
 0x2ed   :  { %v799_v10 = vadd.f32 %v776_v7, %v751_v53  ;;  %1690 = vpow2.f32 %v1083_v40  ;;  %v558_v32 = vsub.f32 %v2768_v0, %v2765_v4  ;;  %v575_v40 = vmul.f32 1.442695, %v555_v46  ;;  %v2769_v4 = vld [vmem:[#allocation25_spill] sm:$0xff]  ;;  %v2771_v46 = vld [vmem:[#allocation19_spill] sm:$0xff] }
 0x2ee   :  { %810 = vst.msk [vmem:[#allocation3 + $0x10] sm:$0xff] %vm29_vm1, %v793_v21  ;;  %1692 = vpow2.f32 %v585_v12  ;;  %v1093_v12 = vmul.f32 1.442695, %v1067_v31  ;;  %v934_v21 = vld [vmem:[#allocation5 + $0x70] sm:$0xff]  ;;  %v1095_v7 = vmul.f32 1.442695, %v1068_v39  ;;  %v1070_v42 = vsub.f32 %v2769_v4, %v2565_v36 }
 0x2ef   :  { %v1675_v62 = vpop.eup %1674  ;;  %816 = vst.msk [vmem:[#allocation3 + $0x40] sm:$0xff] %vm29_vm1, %v799_v10  ;;  %v869_v60 = vpop.xlane.xlu0 %868  ;;  %1694 = vpow2.f32 %v1085_v38  ;;  %v728_v38 = vld [vmem:[#allocation3 + $0x8] sm:$0xff]  ;;  %v581_v56 = vmul.f32 1.442695, %v558_v32  ;;  %v1097_v11 = vmul.f32 1.442695, %v1069_v47 }
 0x2f0   :  { %v1677_v1 = vpop.eup %1676  ;;  %v894_v8 = vadd.f32 %v869_v60, %v830_v37  ;;  %1112 = vperm.xlu1 %1613, %v1675_v62   ;;  %v784_v19 = vpop.xlane.xlu1 %783  ;;  %1696 = vpow2.f32 %v1087_v33  ;;  %v2770_v62 = vld [vmem:[#allocation21_spill] sm:$0xff]  ;;  %v1099_v24 = vmul.f32 1.442695, %v1070_v42  ;;  %v736_v31 = vld [vmem:[#allocation3 + $0x48] sm:$0xff]  ;;  %v733_v32 = vld [vmem:[#allocation3 + $0x30] sm:$0xff] }
 0x2f1   :  { %1107 = vperm.xlu0 %1612, %v1677_v1   ;;  %v803_v2 = vadd.f32 %v784_v19, %v755_v49  ;;  %v1679_v45 = vpop.eup %1678  ;;  %1698 = vpow2.f32 %v579_v6  ;;  %v556_v60 = vsub.f32 %v2770_v62, %v2761_v58  ;;  %v1327_v47 = vld [vmem:[#allocation5 + $0x8] sm:$0xff]  ;;  %v834_v42 = vld [vmem:[#allocation4 + $0x50] sm:$0xff] }
 0x2f2   :  { %910 = vst.msk [vmem:[#allocation4 + $0x30] sm:$0xff] %vm29_vm1, %v894_v8  ;;  %v1681_v13 = vpop.eup %1680  ;;  %1700 = vpow2.f32 %v1089_v48  ;;  %v754_v41 = vmul.f32 %v1679_v45, %v738_v57  ;;  %v1072_v8 = vsub.f32 %v2771_v46, %v2565_v36  ;;  %v1328_v62 = vld [vmem:[#allocation5 + $0x10] sm:$0xff] }
 0x2f3   :  { %820 = vst.msk [vmem:[#allocation3 + $0x60] sm:$0xff] %vm29_vm1, %v803_v2  ;;  %v766_v34 = vpop.xlane.xlu0 %765  ;;  %v1683_v29 = vpop.eup %1682  ;;  %1702 = vpow2.f32 %v1091_v28 }
 0x2f4   :  { %v794_v50 = vadd.f32 %v766_v34, %v746_v55  ;;  %1117 = vperm.xlu1 %1613, %v1681_v13   ;;  %v871_v54 = vpop.xlane.xlu1 %870  ;;  %v1685_v53 = vpop.eup %1684  ;;  %1704 = vpow2.f32 %v575_v40  ;;  %v833_v34 = vld [vmem:[#allocation4 + $0x48] sm:$0xff]  ;;  %v1103_v57 = vmul.f32 1.442695, %v1072_v8  ;;  %v836_v8 = vld [vmem:[#allocation4 + $0x60] sm:$0xff] }
 0x2f5   :  { %1122 = vperm.xlu0 %1612, %v1683_v29   ;;  %v895_v35 = vadd.f32 %v871_v54, %v831_v61  ;;  %v1687_v9 = vpop.eup %1686  ;;  %1706 = vpow2.f32 %v1093_v12  ;;  %v744_v6 = vmul.f32 %v1685_v53, %v728_v38  ;;  %v577_v61 = vmul.f32 1.442695, %v556_v60 }
 0x2f6   :  { %811 = vst.msk [vmem:[#allocation3 + $0x18] sm:$0xff] %vm29_vm1, %v794_v50  ;;  %v1689_v10 = vpop.eup %1688  ;;  %1708 = vpow2.f32 %v1095_v7  ;;  %v757_v48 = vmul.f32 %v1687_v9, %v741_v51  ;;  %v1326_v50 = vld [vmem:[#allocation5] sm:$0xff] }
 0x2f7   :  { %911 = vst.msk [vmem:[#allocation4 + $0x38] sm:$0xff] %vm29_vm1, %v895_v35  ;;  %v782_v37 = vpop.xlane.xlu0 %781  ;;  %v1691_v27 = vpop.eup %1690  ;;  %1710 = vpow2.f32 %v581_v56  ;;  %v2772_v35 = vld [vmem:[#allocation17_spill] sm:$0xff] }
 0x2f8   :  { %v802_v33 = vadd.f32 %v782_v37, %v754_v41  ;;  %1127 = vperm.xlu1 %1613, %v1689_v10   ;;  %v965_v63 = vpop.xlane.xlu1 %964  ;;  %v1693_v1 = vpop.eup %1692  ;;  %1712 = vpow2.f32 %v1097_v11  ;;  %v566_v12 = vsub.f32 %v2772_v35, %v2771_v46  ;;  %v1342_v37 = vmax.f32 %v1326_v50, 1.0  ;;  %v732_v35 = vld [vmem:[#allocation3 + $0x28] sm:$0xff] }
 0x2f9   :  { %1132 = vperm.xlu0 %1612, %v1691_v27   ;;  %v982_v49 = vadd.f32 %v965_v63, %v934_v21  ;;  %v1695_v19 = vpop.eup %1694  ;;  %v752_v13 = vmul.f32 %v1693_v1, %v736_v31  ;;  %1714 = vpow2.f32 %v1099_v24  ;;  %v1246_v21 = vld [vmem:[#allocation3] sm:$0xff]  ;;  %v2773_v63 = vld [vmem:[#allocation24_spill] sm:$0xff] }
 0x2fa   :  { %819 = vst.msk [vmem:[#allocation3 + $0x58] sm:$0xff] %vm29_vm1, %v802_v33  ;;  %v1697_v58 = vpop.eup %1696  ;;  %1716 = vpow2.f32 %v577_v61  ;;  %v731_v27 = vld [vmem:[#allocation3 + $0x20] sm:$0xff]  ;;  %v1343_v33 = vmax.f32 %v1327_v47, 1.0  ;;  %v564_v51 = vsub.f32 %v2773_v63, %v2769_v4  ;;  %v597_v11 = vmul.f32 1.442695, %v566_v12  ;;  %v1248_v4 = vld [vmem:[#allocation3 + $0x10] sm:$0xff] }
 0x2fb   :  { %998 = vst.msk [vmem:[#allocation5 + $0x70] sm:$0xff] %vm29_vm1, %v982_v49  ;;  %v762_v2 = vpop.xlane.xlu0 %761  ;;  %v1699_v39 = vpop.eup %1698  ;;  %1718 = vpow2.f32 %v1103_v57  ;;  %v1330_v61 = vld [vmem:[#allocation5 + $0x20] sm:$0xff]  ;;  %v1311_v63 = vld [vmem:[#allocation4 + $0x8] sm:$0xff] }
 0x2fc   :  { %v792_v45 = vadd.f32 %v762_v2, %v744_v6  ;;  %1137 = vperm.xlu1 %1613, %v1695_v19   ;;  %v788_v55 = vpop.xlane.xlu1 %787  ;;  %v1701_v29 = vpop.eup %1700  ;;  %v749_v7 = vmul.f32 %v1699_v39, %v733_v32  ;;  %1720 = vlog2.f32 %v1246_v21  ;;  %v1344_v2 = vmax.f32 %v1328_v62, 1.0  ;;  %v838_v32 = vld [vmem:[#allocation4 + $0x70] sm:$0xff]  ;;  %v1333_v21 = vld [vmem:[#allocation5 + $0x38] sm:$0xff] }
 0x2fd   :  { %1142 = vperm.xlu0 %1612, %v1697_v58   ;;  %v805_v28 = vadd.f32 %v788_v55, %v757_v48  ;;  %v1703_v40 = vpop.eup %1702  ;;  %v1329_v48 = vld [vmem:[#allocation5 + $0x18] sm:$0xff]  ;;  %v593_v55 = vmul.f32 1.442695, %v564_v51 }
 0x2fe   :  { %809 = vst.msk [vmem:[#allocation3 + $0x8] sm:$0xff] %vm29_vm1, %v792_v45  ;;  %v1705_v41 = vpop.eup %1704  ;;  %v734_v58 = vld [vmem:[#allocation3 + $0x38] sm:$0xff]  ;;  %v1345_v57 = vmax.f32 %v1329_v48, 1.0 }
 0x2ff   :  { %822 = vst.msk [vmem:[#allocation3 + $0x70] sm:$0xff] %vm29_vm1, %v805_v28  ;;  %v778_v0 = vpop.xlane.xlu0 %777  ;;  %v1707_v10 = vpop.eup %1706  ;;  %v747_v46 = vmul.f32 %v1705_v41, %v731_v27 }
 0x300   :  { %v800_v54 = vadd.f32 %v778_v0, %v752_v13  ;;  %1147 = vperm.xlu1 %1613, %v1701_v29   ;;  %v875_v53 = vpop.xlane.xlu1 %874  ;;  %v1709_v56 = vpop.eup %1708  ;;  %v1331_v13 = vld [vmem:[#allocation5 + $0x28] sm:$0xff]  ;;  %v1332_v29 = vld [vmem:[#allocation5 + $0x30] sm:$0xff] }
 0x301   :  { %1152 = vperm.xlu0 %1612, %v1703_v40   ;;  %v897_v9 = vadd.f32 %v875_v53, %v833_v34  ;;  %v1711_v24 = vpop.eup %1710  ;;  %v1249_v40 = vld [vmem:[#allocation3 + $0x18] sm:$0xff]  ;;  %v1347_v47 = vmax.f32 %v1331_v13, 1.0  ;;  %v1254_v13 = vld [vmem:[#allocation3 + $0x40] sm:$0xff] }
 0x302   :  { %817 = vst.msk [vmem:[#allocation3 + $0x48] sm:$0xff] %vm29_vm1, %v800_v54  ;;  %v1713_v19 = vpop.eup %1712  ;;  %v750_v0 = vmul.f32 %v1711_v24, %v734_v58  ;;  %v1346_v54 = vmax.f32 %v1330_v61, 1.0 }
 0x303   :  { %913 = vst.msk [vmem:[#allocation4 + $0x48] sm:$0xff] %vm29_vm1, %v897_v9  ;;  %v772_v38 = vpop.xlane.xlu0 %771  ;;  %v1715_v45 = vpop.eup %1714 }
 0x304   :  { %v797_v60 = vadd.f32 %v772_v38, %v749_v7  ;;  %1157 = vperm.xlu1 %1613, %v1707_v10   ;;  %v877_v49 = vpop.xlane.xlu1 %876  ;;  %v1717_v50 = vpop.eup %1716  ;;  %v1348_v7 = vmax.f32 %v1332_v29, 1.0 }
 0x305   :  { %v1247_v1 = vld [vmem:[#allocation3 + $0x8] sm:$0xff]  ;;  %1162 = vperm.xlu0 %1612, %v1709_v56   ;;  %v898_v6 = vadd.f32 %v877_v49, %v834_v42  ;;  %v1719_v12 = vpop.eup %1718  ;;  %v748_v10 = vmul.f32 %v1717_v50, %v732_v35  ;;  %v1349_v56 = vmax.f32 %v1333_v21, 1.0 }
 0x306   :  { %1722 = vlog2.f32 %v1247_v1  ;;  %814 = vst.msk [vmem:[#allocation3 + $0x30] sm:$0xff] %vm29_vm1, %v797_v60  ;;  %v1721_v38 = vpop.eup %1720  ;;  %v933_v60 = vld [vmem:[#allocation5 + $0x68] sm:$0xff] }
 0x307   :  { %1724 = vrcp.f32 %v1342_v37  ;;  %914 = vst.msk [vmem:[#allocation4 + $0x50] sm:$0xff] %vm29_vm1, %v898_v6  ;;  %v768_v31 = vpop.xlane.xlu0 %767  ;;  %v1334_v37 = vld [vmem:[#allocation5 + $0x40] sm:$0xff] }
 0x308   :  { %1726 = vrcp.f32 %v1343_v33  ;;  %v795_v28 = vadd.f32 %v768_v31, %v747_v46  ;;  %1167 = vperm.xlu1 %1613, %v1713_v19   ;;  %v881_v39 = vpop.xlane.xlu1 %880  ;;  %v1350_v6 = vmax.f32 %v1334_v37, 1.0  ;;  %v1263_v19 = vmul.f32 0.6931472, %v1721_v38  ;;  %v1310_v31 = vld [vmem:[#allocation4] sm:$0xff] }
 0x309   :  { %1728 = vpow2.f32 %v597_v11  ;;  %1172 = vperm.xlu0 %1612, %v1715_v45   ;;  %v900_v34 = vadd.f32 %v881_v39, %v836_v8  ;;  %v1231_v45 = vld [vmem:[#allocation2 + $0x8] sm:$0xff] }
 0x30a   :  { %812 = vst.msk [vmem:[#allocation3 + $0x20] sm:$0xff] %vm29_vm1, %v795_v28  ;;  %1730 = vlog2.f32 %v1248_v4  ;;  %v832_v28 = vld [vmem:[#allocation4 + $0x40] sm:$0xff] }
 0x30b   :  { %1732 = vrcp.f32 %v1344_v2  ;;  %916 = vst.msk [vmem:[#allocation4 + $0x60] sm:$0xff] %vm29_vm1, %v900_v34  ;;  %v774_v53 = vpop.xlane.xlu0 %773  ;;  %v1335_v2 = vld [vmem:[#allocation5 + $0x48] sm:$0xff] }
 0x30c   :  { %1734 = vpow2.f32 %v593_v55  ;;  %v798_v9 = vadd.f32 %v774_v53, %v750_v0  ;;  %v885_v41 = vpop.xlane.xlu1 %884  ;;  %v1256_v55 = vld [vmem:[#allocation3 + $0x50] sm:$0xff]  ;;  %v1230_v0 = vld [vmem:[#allocation2] sm:$0xff] }
 0x30d   :  { %1182 = vperm.xlu0 %1612, %v1719_v12   ;;  %v902_v42 = vadd.f32 %v885_v41, %v838_v32  ;;  %1736 = vlog2.f32 %v1249_v40  ;;  %v1252_v11 = vld [vmem:[#allocation3 + $0x30] sm:$0xff]  ;;  %v1255_v32 = vld [vmem:[#allocation3 + $0x48] sm:$0xff]  ;;  %v1351_v40 = vmax.f32 %v1335_v2, 1.0  ;;  %v1294_v35 = vadd.f32 %v1263_v19, %v1230_v0 }
 0x30e   :  { %1738 = vrcp.f32 %v1345_v57  ;;  %815 = vst.msk [vmem:[#allocation3 + $0x38] sm:$0xff] %vm29_vm1, %v798_v9  ;;  %v1312_v12 = vld [vmem:[#allocation4 + $0x10] sm:$0xff]  ;;  %v1315_v2 = vld [vmem:[#allocation4 + $0x28] sm:$0xff] }
 0x30f   :  { %1740 = vrcp.f32 %v1346_v54  ;;  %918 = vst.msk [vmem:[#allocation4 + $0x70] sm:$0xff] %vm29_vm1, %v902_v42  ;;  %v770_v27 = vpop.xlane.xlu0 %769  ;;  %v740_v42 = vld [vmem:[#allocation3 + $0x68] sm:$0xff] }
 0x310   :  { %v1723_v33 = vpop.eup %1722  ;;  %1742 = vrcp.f32 %v1347_v47  ;;  %v796_v51 = vadd.f32 %v770_v27, %v748_v10  ;;  %v1336_v47 = vld [vmem:[#allocation5 + $0x50] sm:$0xff]  ;;  %v1313_v27 = vld [vmem:[#allocation4 + $0x18] sm:$0xff] }
 0x311   :  { %v1725_v62 = vpop.eup %1724  ;;  %1744 = vrcp.f32 %v1348_v7  ;;  %v1250_v49 = vld [vmem:[#allocation3 + $0x20] sm:$0xff]  ;;  %v1265_v1 = vmul.f32 0.6931472, %v1723_v33  ;;  %v935_v7 = vld [vmem:[#allocation5 + $0x78] sm:$0xff] }
 0x312   :  { %v1727_v24 = vpop.eup %1726  ;;  %813 = vst.msk [vmem:[#allocation3 + $0x28] sm:$0xff] %vm29_vm1, %v796_v51  ;;  %1746 = vlog2.f32 %v1250_v49  ;;  %v1359_v57 = vmul.f32 %v1725_v62, %v1310_v31  ;;  %v1232_v62 = vld [vmem:[#allocation2 + $0x10] sm:$0xff]  ;;  %v1314_v49 = vld [vmem:[#allocation4 + $0x20] sm:$0xff] }
 0x313   :  { %v2638_v46 = vpop.eup %1728  ;;  %v963_v8 = vpop.xlane.xlu0 %962  ;;  %v1361_v48 = vmul.f32 %v1727_v24, %v1311_v63  ;;  %1748 = vrcp.f32 %v1349_v56  ;;  %v1295_v34 = vadd.f32 %v1265_v1, %v1231_v45  ;;  %v1337_v56 = vld [vmem:[#allocation5 + $0x58] sm:$0xff]  ;;  %v1352_v1 = vmax.f32 %v1336_v47, 1.0 }
 0x314   :  { %v1731_v4 = vpop.eup %1730  ;;  %v981_v58 = vadd.f32 %v963_v8, %v933_v60  ;;  %1750 = vlog2.f32 %v1252_v11  ;;  %v1390_v33 = vmul.f32 2.0, %v1359_v57  ;;  %v1338_v11 = vld [vmem:[#allocation5 + $0x60] sm:$0xff]  ;;  %v742_v45 = vld [vmem:[#allocation3 + $0x78] sm:$0xff] }
 0x315   :  { %v1733_v61 = vpop.eup %1732  ;;  %v1253_v39 = vld [vmem:[#allocation3 + $0x38] sm:$0xff]  ;;  %1752 = vrcp.f32 %v1350_v6  ;;  %v1267_v53 = vmul.f32 0.6931472, %v1731_v4  ;;  %v1391_v9 = vmul.f32 2.0, %v1361_v48  ;;  %v1316_v48 = vld [vmem:[#allocation4 + $0x30] sm:$0xff]  ;;  %v1354_v57 = vmax.f32 %v1338_v11, 1.0 }
 0x316   :  { %v1735_v29 = vpop.eup %1734  ;;  %997 = vst.msk [vmem:[#allocation5 + $0x68] sm:$0xff] %vm29_vm1, %v981_v58  ;;  %1754 = vlog2.f32 %v1253_v39  ;;  %v1363_v10 = vmul.f32 %v1733_v61, %v1312_v12  ;;  %v1406_v4 = vsub.f32 %v1294_v35, %v1390_v33 }
 0x317   :  { %v1737_v50 = vpop.eup %1736  ;;  %v873_v54 = vpop.xlane.xlu0 %872  ;;  %1756 = vlog2.f32 %v1256_v55  ;;  %v1407_v63 = vsub.f32 %v1295_v34, %v1391_v9  ;;  %v756_v8 = vmul.f32 %v1735_v29, %v740_v42  ;;  %v1296_v19 = vadd.f32 %v1267_v53, %v1232_v62  ;;  %v1234_v29 = vld [vmem:[#allocation2 + $0x20] sm:$0xff] }
 0x318   :  { %v1739_v41 = vpop.eup %1738  ;;  %v896_v21 = vadd.f32 %v873_v54, %v832_v28  ;;  %1758 = vlog2.f32 %v1254_v13  ;;  %v1269_v60 = vmul.f32 0.6931472, %v1737_v50  ;;  %v1353_v55 = vmax.f32 %v1337_v56, 1.0  ;;  %v1233_v13 = vld [vmem:[#allocation2 + $0x18] sm:$0xff] }
 0x319   :  { %v1741_v37 = vpop.eup %1740  ;;  %v1251_v38 = vld [vmem:[#allocation3 + $0x28] sm:$0xff]  ;;  %1760 = vlog2.f32 %v1255_v32  ;;  %v1365_v61 = vmul.f32 %v1739_v41, %v1313_v27  ;;  %v1392_v28 = vmul.f32 2.0, %v1363_v10  ;;  %v1423_v32 = vsel %vm29_vm1, %v1407_v63, 0.0  ;;  %v1258_v41 = vld [vmem:[#allocation3 + $0x60] sm:$0xff] }
 0x31a   :  { %v1743_v51 = vpop.eup %1742  ;;  %912 = vst.msk [vmem:[#allocation4 + $0x40] sm:$0xff] %vm29_vm1, %v896_v21  ;;  %1762 = vlog2.f32 %v1251_v38  ;;  %v1367_v0 = vmul.f32 %v1741_v37, %v1314_v49  ;;  %v1297_v54 = vadd.f32 %v1269_v60, %v1233_v13  ;;  %v758_v9 = vmul.f32 %v2638_v46, %v742_v45  ;;  %v1257_v38 = vld [vmem:[#allocation3 + $0x58] sm:$0xff]  ;;  %v1236_v45 = vld [vmem:[#allocation2 + $0x30] sm:$0xff] }
 0x31b   :  { %v1745_v6 = vpop.eup %1744  ;;  %v967_v24 = vpop.xlane.xlu0 %966  ;;  %1764 = vrcp.f32 %v1351_v40  ;;  %v1340_v40 = vld [vmem:[#allocation5 + $0x70] sm:$0xff]  ;;  %v1369_v53 = vmul.f32 %v1743_v51, %v1315_v2  ;;  %v1422_v42 = vsel %vm29_vm1, %v1406_v4, 0.0  ;;  %v1393_v27 = vmul.f32 2.0, %v1365_v61  ;;  %v1317_v51 = vld [vmem:[#allocation4 + $0x38] sm:$0xff] }
 0x31c   :  { %v1747_v31 = vpop.eup %1746  ;;  %v983_v58 = vadd.f32 %v967_v24, %v935_v7  ;;  %v1371_v35 = vmul.f32 %v1745_v6, %v1316_v48  ;;  %1766 = vrcp.f32 %v1352_v1  ;;  %v1408_v7 = vsub.f32 %v1296_v19, %v1392_v28  ;;  %v1260_v19 = vld [vmem:[#allocation3 + $0x70] sm:$0xff] }
 0x31d   :  { %v1749_v39 = vpop.eup %1748  ;;  %v1271_v34 = vmul.f32 0.6931472, %v1747_v31  ;;  %1768 = vrcp.f32 %v1353_v55  ;;  %v1424_v56 = vadd.f32 %v1423_v32, %v1422_v42  ;;  %v1356_v62 = vmax.f32 %v1340_v40, 1.0  ;;  %v1237_v55 = vld [vmem:[#allocation2 + $0x38] sm:$0xff]  ;;  %v1339_v28 = vld [vmem:[#allocation5 + $0x68] sm:$0xff] }
 0x31e   :  { %v1751_v50 = vpop.eup %1750  ;;  %999 = vst.msk [vmem:[#allocation5 + $0x78] sm:$0xff] %vm29_vm1, %v983_v58  ;;  %1770 = vrcp.f32 %v1354_v57  ;;  %v1394_v60 = vmul.f32 2.0, %v1367_v0  ;;  %v2647_v11 = vmul.f32 2.0, %v1369_v53  ;;  %v2649_v1 = vmul.f32 2.0, %v1371_v35  ;;  %v835_v0 = vld [vmem:[#allocation4 + $0x58] sm:$0xff]  ;;  %v1235_v32 = vld [vmem:[#allocation2 + $0x28] sm:$0xff] }
 0x31f   :  { %v1753_v12 = vpop.eup %1752  ;;  %v786_v47 = vpop.xlane.xlu0 %785  ;;  %v1298_v21 = vadd.f32 %v1271_v34, %v1234_v29  ;;  %v1275_v63 = vmul.f32 0.6931472, %v1751_v50  ;;  %1772 = vlog2.f32 %v1258_v41  ;;  %v1409_v6 = vsub.f32 %v1297_v54, %v1393_v27  ;;  %v1319_v54 = vld [vmem:[#allocation4 + $0x48] sm:$0xff] }
 0x320   :  { %v1755_v10 = vpop.eup %1754  ;;  %v804_v37 = vadd.f32 %v786_v47, %v756_v8  ;;  %1774 = vlog2.f32 %v1257_v38  ;;  %v1425_v4 = vsel %vm29_vm1, %v1408_v7, 0.0  ;;  %v1373_v13 = vmul.f32 %v1749_v39, %v1317_v51  ;;  %v1320_v47 = vld [vmem:[#allocation4 + $0x50] sm:$0xff]  ;;  %v1238_v38 = vld [vmem:[#allocation2 + $0x40] sm:$0xff]  ;;  %v1239_v51 = vld [vmem:[#allocation2 + $0x48] sm:$0xff] }
 0x321   :  { %v1757_v33 = vpop.eup %1756  ;;  %v1318_v46 = vld [vmem:[#allocation4 + $0x40] sm:$0xff]  ;;  %v1277_v2 = vmul.f32 0.6931472, %v1755_v10  ;;  %v1410_v48 = vsub.f32 %v1298_v21, %v1394_v60  ;;  %v1426_v34 = vadd.f32 %v1425_v4, %v1424_v56  ;;  %v1300_v29 = vadd.f32 %v1275_v63, %v1236_v45  ;;  %v837_v63 = vld [vmem:[#allocation4 + $0x68] sm:$0xff] }
 0x322   :  { %v1759_v49 = vpop.eup %1758  ;;  %821 = vst.msk [vmem:[#allocation3 + $0x68] sm:$0xff] %vm29_vm1, %v804_v37  ;;  %v2652_v61 = vmul.f32 0.6931472, %v1757_v33  ;;  %v1375_v40 = vmul.f32 %v1753_v12, %v1318_v46  ;;  %1776 = vrcp.f32 %v1356_v62  ;;  %v1355_v7 = vmax.f32 %v1339_v28, 1.0 }
 0x323   :  { %v1761_v24 = vpop.eup %1760  ;;  %v790_v8 = vpop.xlane.xlu0 %789  ;;  %v1279_v53 = vmul.f32 0.6931472, %v1759_v49  ;;  %1778 = vlog2.f32 %v1260_v19  ;;  %v1301_v39 = vadd.f32 %v1277_v2, %v1237_v55  ;;  %v1429_v42 = vsel %vm29_vm1, %v1410_v48, 0.0  ;;  %v1322_v2 = vld [vmem:[#allocation4 + $0x60] sm:$0xff] }
 0x324   :  { %v1763_v31 = vpop.eup %1762  ;;  %v806_v58 = vadd.f32 %v790_v8, %v758_v9  ;;  %v1281_v35 = vmul.f32 0.6931472, %v1761_v24  ;;  %v1427_v9 = vsel %vm29_vm1, %v1409_v6, 0.0  ;;  %v1397_v56 = vmul.f32 2.0, %v1373_v13 }
 0x325   :  { %v1765_v57 = vpop.eup %1764  ;;  %v1273_v50 = vmul.f32 0.6931472, %v1763_v31  ;;  %v1341_v27 = vld [vmem:[#allocation5 + $0x78] sm:$0xff]  ;;  %v1428_v33 = vadd.f32 %v1427_v9, %v1426_v34  ;;  %v1398_v49 = vmul.f32 2.0, %v1375_v40  ;;  %v1412_v6 = vsub.f32 %v1300_v29, %v2649_v1 }
 0x326   :  { %823 = vst.msk [vmem:[#allocation3 + $0x78] sm:$0xff] %vm29_vm1, %v806_v58  ;;  %v1767_v10 = vpop.eup %1766  ;;  %v1377_v12 = vmul.f32 %v1765_v57, %v1319_v54  ;;  %v1302_v8 = vadd.f32 %v1279_v53, %v1238_v38  ;;  %v1303_v19 = vadd.f32 %v1281_v35, %v1239_v51  ;;  %v1357_v58 = vmax.f32 %v1341_v27, 1.0  ;;  %v839_v57 = vld [vmem:[#allocation4 + $0x78] sm:$0xff] }
 0x327   :  { %v879_v41 = vpop.xlane.xlu0 %878  ;;  %v1299_v21 = vadd.f32 %v1273_v50, %v1235_v32  ;;  %v1379_v60 = vmul.f32 %v1767_v10, %v1320_v47  ;;  %v1769_v24 = vpop.eup %1768  ;;  %v1430_v48 = vadd.f32 %v1429_v42, %v1428_v33  ;;  %v1413_v45 = vsub.f32 %v1301_v39, %v1397_v56 }
 0x328   :  { %v899_v37 = vadd.f32 %v879_v41, %v835_v0  ;;  %v1771_v4 = vpop.eup %1770  ;;  %v1240_v0 = vld [vmem:[#allocation2 + $0x50] sm:$0xff]  ;;  %v1414_v54 = vsub.f32 %v1302_v8, %v1398_v49  ;;  %v1433_v40 = vsel %vm29_vm1, %v1412_v6, 0.0 }
 0x329   :  { %v1259_v62 = vld [vmem:[#allocation3 + $0x68] sm:$0xff]  ;;  %v1411_v46 = vsub.f32 %v1299_v21, %v2647_v11  ;;  %v1773_v28 = vpop.eup %1772  ;;  %v1399_v11 = vmul.f32 2.0, %v1377_v12  ;;  %v1383_v50 = vmul.f32 %v1771_v4, %v1322_v2  ;;  %v1400_v29 = vmul.f32 2.0, %v1379_v60  ;;  %v1324_v21 = vld [vmem:[#allocation4 + $0x70] sm:$0xff]  ;;  %v1241_v60 = vld [vmem:[#allocation2 + $0x58] sm:$0xff] }
 0x32a   :  { %915 = vst.msk [vmem:[#allocation4 + $0x58] sm:$0xff] %vm29_vm1, %v899_v37  ;;  %1780 = vlog2.f32 %v1259_v62  ;;  %v1775_v1 = vpop.eup %1774  ;;  %v1304_v53 = vadd.f32 %v2652_v61, %v1240_v0  ;;  %v1287_v41 = vmul.f32 0.6931472, %v1773_v28  ;;  %v1437_v33 = vsel %vm29_vm1, %v1414_v54, 0.0  ;;  %v1242_v61 = vld [vmem:[#allocation2 + $0x60] sm:$0xff]  ;;  %v1243_v28 = vld [vmem:[#allocation2 + $0x68] sm:$0xff] }
 0x32b   :  { %v883_v31 = vpop.xlane.xlu0 %882  ;;  %1782 = vrcp.f32 %v1355_v7  ;;  %v1431_v55 = vsel %vm29_vm1, %v1411_v46, 0.0  ;;  %v1415_v39 = vsub.f32 %v1303_v19, %v1399_v11  ;;  %v1435_v7 = vsel %vm29_vm1, %v1413_v45, 0.0 }
 0x32c   :  { %v901_v13 = vadd.f32 %v883_v31, %v837_v63  ;;  %v1432_v34 = vadd.f32 %v1431_v55, %v1430_v48  ;;  %v1777_v47 = vpop.eup %1776  ;;  %v1285_v37 = vmul.f32 0.6931472, %v1775_v1  ;;  %v1402_v12 = vmul.f32 2.0, %v1383_v50  ;;  %v1244_v1 = vld [vmem:[#allocation2 + $0x70] sm:$0xff] }
 0x32d   :  { %v1261_v32 = vld [vmem:[#allocation3 + $0x78] sm:$0xff]  ;;  %v1779_v42 = vpop.eup %1778  ;;  %v1416_v56 = vsub.f32 %v1304_v53, %v1400_v29  ;;  %v1387_v51 = vmul.f32 %v1777_v47, %v1324_v21  ;;  %v1306_v49 = vadd.f32 %v1287_v41, %v1242_v61  ;;  %v1439_v46 = vsel %vm29_vm1, %v1415_v39, 0.0 }
 0x32e   :  { %917 = vst.msk [vmem:[#allocation4 + $0x68] sm:$0xff] %vm29_vm1, %v901_v13  ;;  %1784 = vlog2.f32 %v1261_v32  ;;  %v1434_v35 = vadd.f32 %v1433_v40, %v1432_v34  ;;  %v1291_v8 = vmul.f32 0.6931472, %v1779_v42  ;;  %v1305_v19 = vadd.f32 %v1285_v37, %v1241_v60  ;;  %v1245_v47 = vld [vmem:[#allocation2 + $0x78] sm:$0xff] }
 0x32f   :  { %v887_v9 = vpop.xlane.xlu0 %886  ;;  %1786 = vrcp.f32 %v1357_v58  ;;  %v1418_v45 = vsub.f32 %v1306_v49, %v1402_v12  ;;  %v1441_v55 = vsel %vm29_vm1, %v1416_v56, 0.0 }
 0x330   :  { %v903_v10 = vadd.f32 %v887_v9, %v839_v57  ;;  %v1436_v38 = vadd.f32 %v1435_v7, %v1434_v35  ;;  %v1308_v32 = vadd.f32 %v1291_v8, %v1244_v1 }
 0x331   :  { %v1321_v27 = vld [vmem:[#allocation4 + $0x58] sm:$0xff]  ;;  %v1445_v39 = vsel %vm29_vm1, %v1418_v45, 0.0 }
 0x332   :  { %919 = vst.msk [vmem:[#allocation4 + $0x78] sm:$0xff] %vm29_vm1, %v903_v10  ;;  %v1381_v63 = vmul.f32 %v1769_v24, %v1321_v27  ;;  %v1438_v62 = vadd.f32 %v1437_v33, %v1436_v38  ;;  %v1404_v24 = vmul.f32 2.0, %v1387_v51 }
 0x334   :  { %v1781_v6 = vpop.eup %1780  ;;  %v1401_v2 = vmul.f32 2.0, %v1381_v63  ;;  %v1440_v48 = vadd.f32 %v1439_v46, %v1438_v62  ;;  %v1420_v21 = vsub.f32 %v1308_v32, %v1404_v24  ;;  %v1071_v63 = vsub.f32 %v2758_v20, %v2565_v36 }
 0x335   :  { %v1783_v4 = vpop.eup %1782  ;;  %v1289_v31 = vmul.f32 0.6931472, %v1781_v6  ;;  %v1323_v58 = vld [vmem:[#allocation4 + $0x68] sm:$0xff] }
 0x336   :  { %v1385_v13 = vmul.f32 %v1783_v4, %v1323_v58  ;;  %v1417_v11 = vsub.f32 %v1305_v19, %v1401_v2  ;;  %v1442_v34 = vadd.f32 %v1441_v55, %v1440_v48  ;;  %v1449_v12 = vsel %vm29_vm1, %v1420_v21, 0.0 }
 0x337   :  { %v1307_v57 = vadd.f32 %v1289_v31, %v1243_v28  ;;  %v1101_v51 = vmul.f32 1.442695, %v1071_v63 }
 0x338   :  { %v1785_v0 = vpop.eup %1784  ;;  %v1403_v50 = vmul.f32 2.0, %v1385_v13  ;;  %v1443_v29 = vsel %vm29_vm1, %v1417_v11, 0.0 }
 0x339   :  { %v1787_v54 = vpop.eup %1786  ;;  %v1293_v40 = vmul.f32 0.6931472, %v1785_v0  ;;  %v1325_v53 = vld [vmem:[#allocation4 + $0x78] sm:$0xff]  ;;  %v1444_v35 = vadd.f32 %v1443_v29, %v1442_v34  ;;  %1788 = vpow2.f32 %v1101_v51 }
 0x33a   :  { %v1389_v9 = vmul.f32 %v1787_v54, %v1325_v53  ;;  %v1419_v41 = vsub.f32 %v1307_v57, %v1403_v50 }
 0x33b   :  { %v1309_v7 = vadd.f32 %v1293_v40, %v1245_v47  ;;  %v1446_v42 = vadd.f32 %v1445_v39, %v1444_v35 }
 0x33c   :  { %v1405_v10 = vmul.f32 2.0, %v1389_v9  ;;  %v1447_v37 = vsel %vm29_vm1, %v1419_v41, 0.0 }
 0x33d   :  { %v1448_v38 = vadd.f32 %v1447_v37, %v1446_v42 }
 0x33e   :  { %v1421_v27 = vsub.f32 %v1309_v7, %v1405_v10 }
 0x33f   :  { %v1450_v56 = vadd.f32 %v1449_v12, %v1448_v38 }
 0x340   :  { %v1451_v33 = vsel %vm29_vm1, %v1421_v27, 0.0  ;;  %vm1463_vm1 = vcmask 0  }
 0x341   :  { %v1452_v61 = vadd.f32 %v1451_v33, %v1450_v56 }
 0x343   :  { %1453 = vadd.xlane.f32.xlu1 %v1452_v61  ;;  %v1789_v62 = vpop.eup %1788 }
 0x354   :  { %1177 = vperm.xlu1 %1613, %v1789_v62  }
 0x36f   :  { %v1113_v60 = vpop.permute.xlu1 %1112 }
 0x370   :  { %v1108_v49 = vpop.permute.xlu0 %1107  ;;  %v1186_v8 = vmul.f32 %v2491_v14, %v1113_v60 }
 0x371   :  { %v1185_v6 = vmul.f32 %v2447_v23, %v1108_v49 }
 0x373   :  { %v1118_v46 = vpop.permute.xlu1 %1117  ;;  %v1201_v2 = vadd.f32 %v1186_v8, %v1185_v6 }
 0x374   :  { %v1187_v19 = vmul.f32 %v2464_v52, %v1118_v46  ;;  %v1123_v48 = vpop.permute.xlu0 %1122 }
 0x375   :  { %v1188_v20 = vmul.f32 %v2477_v30, %v1123_v48 }
 0x376   :  { %v1202_v4 = vadd.f32 %v1201_v2, %v1187_v19 }
 0x377   :  { %v1128_v31 = vpop.permute.xlu1 %1127 }
 0x378   :  { %v1203_v58 = vadd.f32 %v1202_v4, %v1188_v20  ;;  %v1189_v45 = vmul.f32 %v2509_v25, %v1128_v31  ;;  %v1133_v55 = vpop.permute.xlu0 %1132 }
 0x379   :  { %v1190_v24 = vmul.f32 %v2521_v16, %v1133_v55 }
 0x37a   :  { %v1204_v28 = vadd.f32 %v1203_v58, %v1189_v45 }
 0x37b   :  { %v1138_v13 = vpop.permute.xlu1 %1137 }
 0x37c   :  { %v1205_v11 = vadd.f32 %v1204_v28, %v1190_v24  ;;  %v1191_v23 = vmul.f32 %v2503_v18, %v1138_v13  ;;  %v1143_v14 = vpop.permute.xlu0 %1142 }
 0x37d   :  { %v1192_v1 = vmul.f32 %v2515_v17, %v1143_v14 }
 0x37e   :  { %v1206_v34 = vadd.f32 %v1205_v11, %v1191_v23 }
 0x37f   :  { %v1148_v52 = vpop.permute.xlu1 %1147 }
 0x380   :  { %v1207_v57 = vadd.f32 %v1206_v34, %v1192_v1  ;;  %v1193_v0 = vmul.f32 %v2466_v26, %v1148_v52  ;;  %v1153_v30 = vpop.permute.xlu0 %1152 }
 0x381   :  { %v1194_v25 = vmul.f32 %v2498_v59, %v1153_v30 }
 0x382   :  { %v1208_v32 = vadd.f32 %v1207_v57, %v1193_v0 }
 0x383   :  { %v1158_v50 = vpop.permute.xlu1 %1157 }
 0x384   :  { %v1209_v29 = vadd.f32 %v1208_v32, %v1194_v25  ;;  %v1195_v54 = vmul.f32 %v2441_v15, %v1158_v50  ;;  %v1163_v16 = vpop.permute.xlu0 %1162 }
 0x385   :  { %v1196_v18 = vmul.f32 %v2485_v5, %v1163_v16 }
 0x386   :  { %v1210_v40 = vadd.f32 %v1209_v29, %v1195_v54 }
 0x387   :  { %v1168_v53 = vpop.permute.xlu1 %1167 }
 0x388   :  { %v1211_v35 = vadd.f32 %v1210_v40, %v1196_v18  ;;  %v1197_v47 = vmul.f32 %v2473_v22, %v1168_v53  ;;  %v1173_v17 = vpop.permute.xlu0 %1172 }
 0x389   :  { %v1198_v21 = vmul.f32 %v2536_v43, %v1173_v17 }
 0x38a   :  { %v1212_v41 = vadd.f32 %v1211_v35, %v1197_v47 }
 0x38c   :  { %v1183_v7 = vpop.permute.xlu0 %1182  ;;  %v1213_v10 = vadd.f32 %v1212_v41, %v1198_v21 }
 0x38d   :  { %v1200_v37 = vmul.f32 %v2540_v3, %v1183_v7 }
 0x3d0   :  { %v1454_v9 = vpop.xlane.xlu1 %1453 }
 0x3d1   :  { %v1455_v26 = vrot.slane %v1454_v9, 4 }
 0x3d3   :  { %v1456_v39 = vadd.f32 %v1455_v26, %v1454_v9 }
 0x3d4   :  { %v1178_v59 = vpop.permute.xlu1 %1177 }
 0x3d5   :  { %v1457_v42 = vrot.slane %v1456_v39, 2  ;;  %v1199_v15 = vmul.f32 %v2493_v44, %v1178_v59 }
 0x3d7   :  { %v1214_v38 = vadd.f32 %v1213_v10, %v1199_v15  ;;  %v1458_v5 = vadd.f32 %v1457_v42, %v1456_v39 }
 0x3d9   :  { %v1215_v27 = vadd.f32 %v1214_v38, %v1200_v37  ;;  %v1459_v12 = vrot.slane %v1458_v5, 1 }
 0x3db   :  { %v1216_v22 = vrot.slane %v1215_v27, 4  ;;  %v1460_v56 = vadd.f32 %v1459_v12, %v1458_v5 }
 0x3dd   :  { %v1217_v33 = vadd.f32 %v1216_v22, %v1215_v27  ;;  %1606 = vpush %v1460_v56 }
 0x3df   :  { %v1218_v61 = vrot.slane %v1217_v33, 2 }
 0x3e1   :  { %v1219_v63 = vadd.f32 %v1218_v61, %v1217_v33 }
 0x3e3   :  { %v1220_v43 = vrot.slane %v1219_v63, 1 }
 0x3e5   :  { %v1221_v51 = vadd.f32 %v1220_v43, %v1219_v63 }
 0x3e7   :  { %v1222_v62 = vmax.f32 %v1221_v51, 1e-37 }
 0x3e9   :  { %1790 = vlog2.f32 %v1222_v62 }
 0x3f3   :  { %v1791_v60 = vpop.eup %1790 }
 0x3f4   :  { %v1224_v49 = vmul.f32 0.6931472, %v1791_v60 }
 0x3f6   :  { %v1225_v44 = vadd.f32 %v1224_v49, %v2565_v36 }
 0x3f8   :  { %1226 = vst [vmem:[%s2713_s5] sm:$0x1] %v1225_v44 }
 0x40e   :  { %s1607_s4 = spop %1606 }
 0x40f   :  { %v1462_v3 = vstv %s1607_s4 }
 0x410   :  { %1464 = vst.msk [vmem:[#allocation7] sm:$0x1] %vm1463_vm1, %v1462_v3 }
 0x411   :  { %1803 = shalt.err (!%p1800_p4)
}
 0x412   :  { %s1804_s21 = scalar_lea.hbm %s2714_s6, 16 }
 0x413   :  { %p1805_p5 = scmp.ne.s32.totalorder %s2714_s6, %s1804_s21  ;;  %p1808_p6 = scmp.lt.u32.totalorder %s1804_s21, %s2714_s6 }
 0x415   :  { %p1810_p7 = pnand %p1808_p6, %p1805_p5 }
 0x417   :  { %1813 = shalt.err (!%p1810_p7)
}
 0x418   :  { %1476 = dma.vmem_to_hbm [thread:$0]  %s1474_s16, 16, %s2714_s6, [#allocation8]  }
 0x419   :  { %1814 = dma.done.wait [#allocation8], 16  }
 0x41a   :  { %1815 = vsyncadd [#allocation8], 4294967280 }
 0x41b   :  { %1482 = vsyncpa [#allocation8], 1 }

</bundles_post_ra>
